<compile_context>
chip_gen: v6e
topology: v6e:2x2x1
jax: 0.10.0
libtpu: 0.0.40
codegen_flags: <defaults>
</compile_context>

<pallas_src>
import functools
import math

import jax
import jax.numpy as jnp
from jax.experimental import pallas as pl
from jax.experimental.pallas import tpu as pltpu


# ----------------------------------------------------------------------------
# Kernel bodies
# ----------------------------------------------------------------------------
def _attention_core(q_blk, k_ref, v_ref,
                    wq_ref, wk_ref, wv_ref, wo_ref,
                    bq_ref, bk_ref, bv_ref, bo_ref,
                    out_ref, probs_ref, k_scr, v_scr, num_heads):
    """Shared body. q_blk: (Bt, Lq, D) bf16 values already loaded.
    k_ref/v_ref: (Bt, L, D) bf16 refs. out_ref: (Bt, Lq, D).
    probs_ref: (Bt, H, Lq, L). k_scr/v_scr: (Bt, L, D) bf16 projected K/V cache."""
    Bt, Lq, D = q_blk.shape
    L = k_ref.shape[1]
    H = num_heads
    hd = D // H
    scale = 1.0 / math.sqrt(hd)

    # ---- K/V projections: once per batch tile (first query-tile step) ----
    @pl.when(pl.program_id(1) == 0)
    def _project_kv():
        xk = k_ref[...].reshape(Bt * L, D)                       # bf16 operands
        xv = xk if v_ref is k_ref else v_ref[...].reshape(Bt * L, D)
        kp = jnp.dot(xk, wk_ref[...], preferred_element_type=jnp.float32) + bk_ref[...]
        vp = jnp.dot(xv, wv_ref[...], preferred_element_type=jnp.float32) + bv_ref[...]
        k_scr[...] = kp.reshape(Bt, L, D).astype(jnp.bfloat16)
        v_scr[...] = vp.reshape(Bt, L, D).astype(jnp.bfloat16)

    # ---- Q projection: Bt*Lq rows per step fill the MXU M dimension ----
    q = jnp.dot(q_blk.reshape(Bt * Lq, D), wq_ref[...],
                preferred_element_type=jnp.float32) + bq_ref[...]
    # Fold 1/sqrt(head_dim) into q (cheaper than scaling (Bt,Lq,L) scores); a
    # constant scale does not change bf16 relative rounding error.
    q = (q * scale).astype(jnp.bfloat16).reshape(Bt, Lq, D)

    kf = k_scr[...]
    vf = v_scr[...]

    acc = jnp.zeros((Bt, Lq, hd), jnp.float32)
    for h in range(H):                       # static head loop (H == 1 in practice)
        sl = slice(h * hd, (h + 1) * hd)
        qh, kh, vh = q[:, :, sl], kf[:, :, sl], vf[:, :, sl]

        # Scores: contract last dims directly (no materialized transpose).
        s = jnp.einsum("bqd,bkd->bqk", qh, kh,
                       preferred_element_type=jnp.float32)       # (Bt, Lq, L) f32
        s = s - jnp.max(s, axis=-1, keepdims=True)
        e = jnp.exp(s)
        # TODO(synk): bf16 exp on v6e/v7x would double EUP throughput; kept f32
        # (v5e has no bf16 EUP and probs are the interpretability output).
        p = e / jnp.sum(e, axis=-1, keepdims=True)               # exact reciprocal

        probs_ref[:, h, :, :] = p.astype(probs_ref.dtype)
        acc = acc + jnp.einsum("bqk,bkd->bqd", p.astype(jnp.bfloat16), vh,
                               preferred_element_type=jnp.float32)

    if H > 1:                                # head mean; skipped when H == 1
        acc = acc * (1.0 / H)

    # ---- output projection (head_dim == D enforced by the wrapper) ----
    out = jnp.dot(acc.astype(jnp.bfloat16).reshape(Bt * Lq, hd), wo_ref[...],
                  preferred_element_type=jnp.float32) + bo_ref[...]
    out_ref[...] = out.reshape(Bt, Lq, D).astype(out_ref.dtype)


def _imha_kernel(q_ref, k_ref, v_ref,
                 wq_ref, wk_ref, wv_ref, wo_ref,
                 bq_ref, bk_ref, bv_ref, bo_ref,
                 out_ref, probs_ref, k_scr, v_scr, *, num_heads):
    """Cross-attention path: three separate input streams."""
    _attention_core(q_ref[...], k_ref, v_ref,
                    wq_ref, wk_ref, wv_ref, wo_ref,
                    bq_ref, bk_ref, bv_ref, bo_ref,
                    out_ref, probs_ref, k_scr, v_scr, num_heads)


def _imha_self_kernel(x_ref,
                      wq_ref, wk_ref, wv_ref, wo_ref,
                      bq_ref, bk_ref, bv_ref, bo_ref,
                      out_ref, probs_ref, k_scr, v_scr, *, num_heads, q_tile):
    """Self-attention path: a single (Bt, L, D) block feeds q, k and v."""
    q_start = pl.multiple_of(pl.program_id(1) * q_tile, q_tile)
    q_blk = x_ref[:, pl.ds(q_start, q_tile), :]
    _attention_core(q_blk, x_ref, x_ref,
                    wq_ref, wk_ref, wv_ref, wo_ref,
                    bq_ref, bk_ref, bv_ref, bo_ref,
                    out_ref, probs_ref, k_scr, v_scr, num_heads)


# ----------------------------------------------------------------------------
# Builders / tile selection
# ----------------------------------------------------------------------------
def _vmem_capacity_bytes():
    try:
        return int(pltpu.get_tpu_info().vmem_capacity_bytes)
    except Exception:                                   # noqa: BLE001
        return 64 * 1024 * 1024                          # conservative (v7x per-TC)


def _largest_divisor(n, cap):
    cap = max(1, min(n, cap))
    for d in range(cap, 0, -1):
        if n % d == 0:
            return d
    return 1


def _vmem_estimate(Bt, Lq, L, D, H, out_bytes, probs_bytes, self_attn):
    """Rough per-step VMEM footprint (bytes) for the tile-selection budget."""
    weights = 4 * D * D * 2 + 4 * D * 4                 # bf16 W (1 buf) + f32 b
    if self_attn:
        inputs = 2 * Bt * L * D * 2                     # one shared bf16 stream
    else:
        inputs = 2 * (Bt * Lq * D + 2 * Bt * L * D) * 2
    scratch = 2 * Bt * L * D * 2                        # projected K/V bf16 cache
    outputs = 2 * (Bt * Lq * D * out_bytes + Bt * H * Lq * L * probs_bytes)
    working = 4 * Bt * Lq * L * 4 + 3 * Bt * Lq * D * 4  # scores/exp + q/acc f32
    return weights + inputs + scratch + outputs + working


def _select_tiles(B, L, D, H, out_bytes, probs_bytes, self_attn, budget):
    # Query tile: fill the 256-wide v6e/v7x MXU when possible, else 128, else L.
    if L % 256 == 0:
        Lq = 256
    elif L % 128 == 0:
        Lq = 128
    else:
        Lq = L
    # Batch tile: amortize ~0.35us per-step overhead (target >= 512 rows / step)
    # but keep >= 2 batch grid steps so v7x can shard across both TensorCores.
    cap = B // 2 if B >= 2 else 1
    cap = min(cap, max(1, 512 // max(Lq, 1)))
    Bt = _largest_divisor(B, cap)
    while _vmem_estimate(Bt, Lq, L, D, H, out_bytes, probs_bytes, self_attn) > budget:
        if Bt > 1:
            Bt = _largest_divisor(B, Bt // 2)
        elif Lq > 128 and L % 128 == 0:
            Lq = 128
        else:
            # TODO(synk): stream keys (flash-style) when full-L K/V cannot fit.
            break
    return Bt, Lq


@functools.lru_cache(maxsize=None)
def _build_imha_call(B, L, D, H, Bt, Lq, out_dtype, probs_dtype,
                     self_attn, vmem_limit, single_buffer):
    out_dtype = jnp.dtype(out_dtype)
    probs_dtype = jnp.dtype(probs_dtype)

    def _const_spec(shape):
        """Grid-invariant block (weights/biases)."""
        if single_buffer:
            try:
                return pl.BlockSpec(shape, lambda b, q: (0, 0),
                                    pipeline_mode=pl.Buffered(1))
            except TypeError:           # older BlockSpec without pipeline_mode
                pass
        return pl.BlockSpec(shape, lambda b, q: (0, 0))

    w_spec = _const_spec((D, D))
    b_spec = _const_spec((1, D))
    q_spec = pl.BlockSpec((Bt, Lq, D), lambda b, q: (b, q, 0))
    kv_spec = pl.BlockSpec((Bt, L, D), lambda b, q: (b, 0, 0))

    out_shape = (
        jax.ShapeDtypeStruct((B, L, D), out_dtype),
        jax.ShapeDtypeStruct((B, H, L, L), probs_dtype),
    )
    out_specs = (
        pl.BlockSpec((Bt, Lq, D), lambda b, q: (b, q, 0)),
        pl.BlockSpec((Bt, H, Lq, L), lambda b, q: (b, 0, q, 0)),
    )

    if self_attn:
        kernel = functools.partial(_imha_self_kernel, num_heads=H, q_tile=Lq)
        in_specs = [kv_spec, w_spec, w_spec, w_spec, w_spec,
                    b_spec, b_spec, b_spec, b_spec]
        n_streams = 1
    else:
        kernel = functools.partial(_imha_kernel, num_heads=H)
        in_specs = [q_spec, kv_spec, kv_spec, w_spec, w_spec, w_spec, w_spec,
                    b_spec, b_spec, b_spec, b_spec]
        n_streams = 3

    hd = D // H
    flops = 2 * B * L * D * D * 3 + 4 * B * H * L * L * hd + 2 * B * L * hd * D
    bytes_accessed = (n_streams * B * L * D * 2 + 4 * D * D * 2 + 4 * D * 4
                      + B * L * D * out_dtype.itemsize
                      + B * H * L * L * probs_dtype.itemsize)
    cost = pl.CostEstimate(flops=flops, transcendentals=B * H * L * L,
                           bytes_accessed=bytes_accessed)

    return pl.pallas_call(
        kernel,
        out_shape=out_shape,
        grid_spec=pltpu.PrefetchScalarGridSpec(
            num_scalar_prefetch=0,
            grid=(B // Bt, L // Lq),
            in_specs=in_specs,
            out_specs=out_specs,
            scratch_shapes=[pltpu.VMEM((Bt, L, D), jnp.bfloat16),   # projected K
                            pltpu.VMEM((Bt, L, D), jnp.bfloat16)],  # projected V
        ),
        compiler_params=pltpu.CompilerParams(
            # Batch tiles are independent -> megacore-shardable on v7x; the
            # query-tile axis carries the projected-K/V scratch -> "arbitrary".
            dimension_semantics=("parallel", "arbitrary"),
            vmem_limit_bytes=int(vmem_limit),
        ),
        cost_estimate=cost,
    )


# ----------------------------------------------------------------------------
# Public wrapper
# ----------------------------------------------------------------------------
_SINGLE_BUFFER_WEIGHTS = None   # resolved once per process on the first call


def interpretable_mha(query, key, value, params, num_heads, *,
                      batch_tile=None, q_tile=None, probs_dtype=jnp.bfloat16):
    """query/key/value: (B, L, D). Returns (out (B, L, D), probs (B, H, L, L))."""
    global _SINGLE_BUFFER_WEIGHTS

    B, L, D = query.shape
    H = num_heads
    assert D % H == 0, "input_dim must be divisible by num_heads"
    head_dim = D // H
    # Mirror the PyTorch module: out_proj = Linear(D, D) is applied to a
    # (B, L, head_dim) tensor, so the forward only shape-checks for H == 1.
    assert head_dim == D, (
        "InterpretableMultiheadAttention.out_proj only shape-checks when "
        "num_heads == 1 (head_dim == input_dim)")

    self_attn = (query is key) and (key is value)

    wq_t, bq, wk_t, bk, wv_t, bv, wo_t, bo = params   # W pre-transposed: (in, out)
    # bf16 weights/activations once, in the wrapper (halves DMA + VMEM); biases
    # stay f32 since accumulation is f32.
    wq_t, wk_t, wv_t, wo_t = (jnp.asarray(w, jnp.bfloat16)
                              for w in (wq_t, wk_t, wv_t, wo_t))
    bq, bk, bv, bo = (jnp.asarray(b, jnp.float32).reshape(1, D)
                      for b in (bq, bk, bv, bo))

    out_dtype = jnp.dtype(query.dtype)
    probs_dtype = jnp.dtype(probs_dtype)
    q_b = jnp.asarray(query, jnp.bfloat16)
    if self_attn:
        inputs = (q_b,)
    else:
        inputs = (q_b, jnp.asarray(key, jnp.bfloat16), jnp.asarray(value, jnp.bfloat16))

    # VMEM-aware tile selection (v7x has 64 MiB/TC; v5e/v6e 128 MiB).
    vmem_cap = _vmem_capacity_bytes()
    vmem_limit = max(32 << 20, min(int(0.75 * vmem_cap), 100 << 20))
    budget = int(0.8 * vmem_limit)
    Bt, Lq = _select_tiles(B, L, D, H, out_dtype.itemsize, probs_dtype.itemsize,
                           self_attn, budget)
    if batch_tile is not None and B % batch_tile == 0:
        Bt = batch_tile
    if q_tile is not None and L % q_tile == 0:
        Lq = q_tile

    args = (*inputs, wq_t, wk_t, wv_t, wo_t, bq, bk, bv, bo)

    def build(single_buffer):
        return _build_imha_call(B, L, D, H, Bt, Lq, out_dtype, probs_dtype,
                                self_attn, int(vmem_limit), bool(single_buffer))

    if _SINGLE_BUFFER_WEIGHTS is None:
        # One-time probe for single-buffered grid-invariant weights; the result is
        # cached so subsequent calls never re-trace/re-compile both variants.
        try:
            out, probs = build(True)(*args)
            _SINGLE_BUFFER_WEIGHTS = True
            return out, probs
        except Exception:                               # noqa: BLE001
            _SINGLE_BUFFER_WEIGHTS = False
    return build(_SINGLE_BUFFER_WEIGHTS)(*args)


# ----------------------------------------------------------------------------
# Reference + test harness
# ----------------------------------------------------------------------------
def _init_linear(rng, in_dim, out_dim):
    """PyTorch-style nn.Linear init. Returns (W^T (in,out), b (1,out)) in f32."""
    kw, kb = jax.random.split(rng)
    bound = 1.0 / math.sqrt(in_dim)
    w = jax.random.uniform(kw, (out_dim, in_dim), jnp.float32, -bound, bound)
    b = jax.random.uniform(kb, (1, out_dim), jnp.float32, -bound, bound)
    return w.T, b


def _reference(query, key, value, params, num_heads):
    """Pure-JAX f32 replica of the PyTorch forward (eval mode) for verification."""
    B, L, D = query.shape
    H = num_heads
    hd = D // H
    wq_t, bq, wk_t, bk, wv_t, bv, wo_t, bo = params
    q = query @ wq_t + bq
    k = key @ wk_t + bk
    v = value @ wv_t + bv
    q = q.reshape(B, L, H, hd).transpose(0, 2, 1, 3)
    k = k.reshape(B, L, H, hd).transpose(0, 2, 1, 3)
    v = v.reshape(B, L, H, hd).transpose(0, 2, 1, 3)
    s = jnp.einsum("bhqd,bhkd->bhqk", q, k) / math.sqrt(hd)
    p = jax.nn.softmax(s, axis=-1)
    o = jnp.einsum("bhqk,bhkd->bhqd", p, v)
    o = o.transpose(0, 2, 1, 3).reshape(B, L, H, hd).mean(axis=2)
    o = o @ wo_t + bo
    return o, p


if __name__ == "__main__":
    B, L, D = 2, 8, 32
    H = 1  # out_proj only shape-checks when num_heads == 1 (see wrapper assert)

    root = jax.random.PRNGKey(0)
    kq, kk, kv, k1, k2, k3, k4, kx = jax.random.split(root, 8)

    query = jax.random.normal(kq, (B, L, D), jnp.float32)
    key_x = jax.random.normal(kk, (B, L, D), jnp.float32)
    value = jax.random.normal(kv, (B, L, D), jnp.float32)

    wq_t, bq = _init_linear(k1, D, D)
    wk_t, bk = _init_linear(k2, D, D)
    wv_t, bv = _init_linear(k3, D, D)
    wo_t, bo = _init_linear(k4, D, D)
    params = (wq_t, bq, wk_t, bk, wv_t, bv, wo_t, bo)

    # --- cross-attention path (three separate input streams) ---
    out, probs = interpretable_mha(query, key_x, value, params, H)
    out, probs = jax.block_until_ready((out, probs))
    out_ref, probs_ref = _reference(query, key_x, value, params, H)
    assert out.shape == (B, L, D) and probs.shape == (B, H, L, L)
    # bf16 MXU operands (f32 accumulation) + bf16 probs storage set the tolerance.
    assert jnp.allclose(out, out_ref, atol=3e-2, rtol=3e-2), \
        float(jnp.max(jnp.abs(out - out_ref)))
    assert jnp.allclose(probs.astype(jnp.float32), probs_ref, atol=1e-2, rtol=1e-2), \
        float(jnp.max(jnp.abs(probs.astype(jnp.float32) - probs_ref)))

    # --- self-attention path (single aliased input stream) ---
    x = jax.random.normal(kx, (B, L, D), jnp.float32)
    out2, probs2 = interpretable_mha(x, x, x, params, H)
    out2, probs2 = jax.block_until_ready((out2, probs2))
    out2_ref, probs2_ref = _reference(x, x, x, params, H)
    assert jnp.allclose(out2, out2_ref, atol=3e-2, rtol=3e-2), \
        float(jnp.max(jnp.abs(out2 - out2_ref)))
    assert jnp.allclose(probs2.astype(jnp.float32), probs2_ref, atol=1e-2, rtol=1e-2), \
        float(jnp.max(jnp.abs(probs2.astype(jnp.float32) - probs2_ref)))

    print("KERNEL_OK")
</pallas_src>

<mosaic_0001>
module attributes {stable_mosaic.version = 11 : i64} {
  func.func @_imha_kernel(%arg0: i32, %arg1: i32, %arg2: memref<1x8x32xbf16, #tpu.memory_space<vmem>>, %arg3: memref<1x8x32xbf16, #tpu.memory_space<vmem>>, %arg4: memref<1x8x32xbf16, #tpu.memory_space<vmem>>, %arg5: memref<32x32xbf16, #tpu.memory_space<vmem>>, %arg6: memref<32x32xbf16, #tpu.memory_space<vmem>>, %arg7: memref<32x32xbf16, #tpu.memory_space<vmem>>, %arg8: memref<32x32xbf16, #tpu.memory_space<vmem>>, %arg9: memref<1x32xf32, #tpu.memory_space<vmem>>, %arg10: memref<1x32xf32, #tpu.memory_space<vmem>>, %arg11: memref<1x32xf32, #tpu.memory_space<vmem>>, %arg12: memref<1x32xf32, #tpu.memory_space<vmem>>, %arg13: memref<1x8x32xf32, #tpu.memory_space<vmem>>, %arg14: memref<1x1x8x8xbf16, #tpu.memory_space<vmem>>, %arg15: memref<1x8x32xbf16, #tpu.memory_space<vmem>>, %arg16: memref<1x8x32xbf16, #tpu.memory_space<vmem>>) attributes {dimension_semantics = [#tpu.dimension_semantics<parallel>, #tpu.dimension_semantics<arbitrary>], iteration_bounds = array<i64: 2, 1>, scalar_prefetch = 0 : i64, scratch_operands = 2 : i64, tpu.core_type = #tpu.core_type<tc>, window_params = [{transform_indices = @transform_0, window_bounds = array<i64: 1, 8, 32>}, {transform_indices = @transform_1, window_bounds = array<i64: 1, 8, 32>}, {transform_indices = @transform_2, window_bounds = array<i64: 1, 8, 32>}, {pipeline_mode = #tpu.pipeline_mode<synchronous>, transform_indices = @transform_3, window_bounds = array<i64: 32, 32>}, {pipeline_mode = #tpu.pipeline_mode<synchronous>, transform_indices = @transform_4, window_bounds = array<i64: 32, 32>}, {pipeline_mode = #tpu.pipeline_mode<synchronous>, transform_indices = @transform_5, window_bounds = array<i64: 32, 32>}, {pipeline_mode = #tpu.pipeline_mode<synchronous>, transform_indices = @transform_6, window_bounds = array<i64: 32, 32>}, {pipeline_mode = #tpu.pipeline_mode<synchronous>, transform_indices = @transform_7, window_bounds = array<i64: 1, 32>}, {pipeline_mode = #tpu.pipeline_mode<synchronous>, transform_indices = @transform_8, window_bounds = array<i64: 1, 32>}, {pipeline_mode = #tpu.pipeline_mode<synchronous>, transform_indices = @transform_9, window_bounds = array<i64: 1, 32>}, {pipeline_mode = #tpu.pipeline_mode<synchronous>, transform_indices = @transform_10, window_bounds = array<i64: 1, 32>}, {transform_indices = @transform_11, window_bounds = array<i64: 1, 8, 32>}, {transform_indices = @transform_12, window_bounds = array<i64: 1, 1, 8, 8>}]} {
    %c0 = arith.constant 0 : index
    %c0_0 = arith.constant 0 : index
    %c0_1 = arith.constant 0 : index
    %0 = vector.load %arg2[%c0, %c0_0, %c0_1] : memref<1x8x32xbf16, #tpu.memory_space<vmem>>, vector<1x8x32xbf16>
    %c0_i32 = arith.constant 0 : i32
    %1 = arith.cmpi eq, %arg1, %c0_i32 : i32
    %2 = arith.extui %1 : i1 to i32
    %c0_i32_2 = arith.constant 0 : i32
    %3 = arith.cmpi ne, %2, %c0_i32_2 : i32
    scf.if %3 {
      %c0_31 = arith.constant 0 : index
      %c0_32 = arith.constant 0 : index
      %c0_33 = arith.constant 0 : index
      %43 = vector.load %arg3[%c0_31, %c0_32, %c0_33] : memref<1x8x32xbf16, #tpu.memory_space<vmem>>, vector<1x8x32xbf16>
      %44 = vector.shape_cast %43 : vector<1x8x32xbf16> to vector<8x32xbf16>
      %c0_34 = arith.constant 0 : index
      %c0_35 = arith.constant 0 : index
      %c0_36 = arith.constant 0 : index
      %45 = vector.load %arg4[%c0_34, %c0_35, %c0_36] : memref<1x8x32xbf16, #tpu.memory_space<vmem>>, vector<1x8x32xbf16>
      %46 = vector.shape_cast %45 : vector<1x8x32xbf16> to vector<8x32xbf16>
      %c0_37 = arith.constant 0 : index
      %c0_38 = arith.constant 0 : index
      %47 = vector.load %arg6[%c0_37, %c0_38] : memref<32x32xbf16, #tpu.memory_space<vmem>>, vector<32x32xbf16>
      %cst_39 = arith.constant dense<0.000000e+00> : vector<8x32xf32>
      %48 = tpu.matmul %44, %47, %cst_39 {dimension_numbers = #tpu.dot_dimension_numbers<[1], [0], [0], [1], [0, 0, 1, 1], [], []>} : vector<8x32xbf16>, vector<32x32xbf16>, vector<8x32xf32> -> vector<8x32xf32>
      %c0_40 = arith.constant 0 : index
      %c0_41 = arith.constant 0 : index
      %49 = vector.load %arg10[%c0_40, %c0_41] : memref<1x32xf32, #tpu.memory_space<vmem>>, vector<1x32xf32>
      %50 = vector.broadcast %49 : vector<1x32xf32> to vector<8x32xf32>
      %51 = arith.addf %48, %50 : vector<8x32xf32>
      %c0_42 = arith.constant 0 : index
      %c0_43 = arith.constant 0 : index
      %52 = vector.load %arg7[%c0_42, %c0_43] : memref<32x32xbf16, #tpu.memory_space<vmem>>, vector<32x32xbf16>
      %cst_44 = arith.constant dense<0.000000e+00> : vector<8x32xf32>
      %53 = tpu.matmul %46, %52, %cst_44 {dimension_numbers = #tpu.dot_dimension_numbers<[1], [0], [0], [1], [0, 0, 1, 1], [], []>} : vector<8x32xbf16>, vector<32x32xbf16>, vector<8x32xf32> -> vector<8x32xf32>
      %c0_45 = arith.constant 0 : index
      %c0_46 = arith.constant 0 : index
      %54 = vector.load %arg11[%c0_45, %c0_46] : memref<1x32xf32, #tpu.memory_space<vmem>>, vector<1x32xf32>
      %55 = vector.broadcast %54 : vector<1x32xf32> to vector<8x32xf32>
      %56 = arith.addf %53, %55 : vector<8x32xf32>
      %57 = vector.shape_cast %51 : vector<8x32xf32> to vector<1x8x32xf32>
      %58 = arith.truncf %57 : vector<1x8x32xf32> to vector<1x8x32xbf16>
      %c0_47 = arith.constant 0 : index
      %c0_48 = arith.constant 0 : index
      %c0_49 = arith.constant 0 : index
      %59 = vector.load %arg15[%c0_47, %c0_48, %c0_49] : memref<1x8x32xbf16, #tpu.memory_space<vmem>>, vector<1x8x32xbf16>
      tpu.vector_store %arg15[%c0_47, %c0_48, %c0_49], %58 {strides = array<i32>} : memref<1x8x32xbf16, #tpu.memory_space<vmem>>, vector<1x8x32xbf16>,
      %60 = vector.shape_cast %56 : vector<8x32xf32> to vector<1x8x32xf32>
      %61 = arith.truncf %60 : vector<1x8x32xf32> to vector<1x8x32xbf16>
      %c0_50 = arith.constant 0 : index
      %c0_51 = arith.constant 0 : index
      %c0_52 = arith.constant 0 : index
      %62 = vector.load %arg16[%c0_50, %c0_51, %c0_52] : memref<1x8x32xbf16, #tpu.memory_space<vmem>>, vector<1x8x32xbf16>
      tpu.vector_store %arg16[%c0_50, %c0_51, %c0_52], %61 {strides = array<i32>} : memref<1x8x32xbf16, #tpu.memory_space<vmem>>, vector<1x8x32xbf16>,
    } else {
    }
    %4 = vector.shape_cast %0 : vector<1x8x32xbf16> to vector<8x32xbf16>
    %c0_3 = arith.constant 0 : index
    %c0_4 = arith.constant 0 : index
    %5 = vector.load %arg5[%c0_3, %c0_4] : memref<32x32xbf16, #tpu.memory_space<vmem>>, vector<32x32xbf16>
    %cst = arith.constant dense<0.000000e+00> : vector<8x32xf32>
    %6 = tpu.matmul %4, %5, %cst {dimension_numbers = #tpu.dot_dimension_numbers<[1], [0], [0], [1], [0, 0, 1, 1], [], []>} : vector<8x32xbf16>, vector<32x32xbf16>, vector<8x32xf32> -> vector<8x32xf32>
    %c0_5 = arith.constant 0 : index
    %c0_6 = arith.constant 0 : index
    %7 = vector.load %arg9[%c0_5, %c0_6] : memref<1x32xf32, #tpu.memory_space<vmem>>, vector<1x32xf32>
    %8 = vector.broadcast %7 : vector<1x32xf32> to vector<8x32xf32>
    %9 = arith.addf %6, %8 : vector<8x32xf32>
    %cst_7 = arith.constant 0.176776692 : f32
    %10 = vector.broadcast %cst_7 : f32 to vector<8x32xf32>
    %11 = arith.mulf %9, %10 : vector<8x32xf32>
    %12 = arith.truncf %11 : vector<8x32xf32> to vector<8x32xbf16>
    %13 = vector.shape_cast %12 : vector<8x32xbf16> to vector<1x8x32xbf16>
    %c0_8 = arith.constant 0 : index
    %c0_9 = arith.constant 0 : index
    %c0_10 = arith.constant 0 : index
    %14 = vector.load %arg15[%c0_8, %c0_9, %c0_10] : memref<1x8x32xbf16, #tpu.memory_space<vmem>>, vector<1x8x32xbf16>
    %c0_11 = arith.constant 0 : index
    %c0_12 = arith.constant 0 : index
    %c0_13 = arith.constant 0 : index
    %15 = vector.load %arg16[%c0_11, %c0_12, %c0_13] : memref<1x8x32xbf16, #tpu.memory_space<vmem>>, vector<1x8x32xbf16>
    %cst_14 = arith.constant 0.000000e+00 : f32
    %16 = vector.broadcast %cst_14 : f32 to vector<1x8x32xf32>
    "tpu.trace_start"() <{level = 10 : i32, message = "bqd,bkd->bqk"}> : () -> ()
    %cst_15 = arith.constant dense<0.000000e+00> : vector<1x8x8xf32>
    %17 = tpu.matmul %13, %14, %cst_15 {dimension_numbers = #tpu.dot_dimension_numbers<[2], [2], [1], [1], [0, 0, 0, 1, 1, 1], [0], [0]>} : vector<1x8x32xbf16>, vector<1x8x32xbf16>, vector<1x8x8xf32> -> vector<1x8x8xf32>
    "tpu.trace_stop"() : () -> ()
    %cst_16 = arith.constant dense<0xFF800000> : vector<1x8xf32>
    %18 = vector.multi_reduction <maximumf>, %17, %cst_16 [2] : vector<1x8x8xf32> to vector<1x8xf32>
    %19 = vector.shape_cast %18 : vector<1x8xf32> to vector<1x8x1xf32>
    %20 = vector.broadcast %19 : vector<1x8x1xf32> to vector<1x8x8xf32>
    %21 = arith.subf %17, %20 : vector<1x8x8xf32>
    %22 = math.exp %21 : vector<1x8x8xf32>
    %cst_17 = arith.constant dense<0.000000e+00> : vector<1x8xf32>
    %23 = vector.multi_reduction <add>, %22, %cst_17 [2] : vector<1x8x8xf32> to vector<1x8xf32>
    %24 = vector.shape_cast %23 : vector<1x8xf32> to vector<1x8x1xf32>
    %25 = vector.broadcast %24 : vector<1x8x1xf32> to vector<1x8x8xf32>
    %26 = arith.divf %22, %25 : vector<1x8x8xf32>
    %27 = arith.truncf %26 : vector<1x8x8xf32> to vector<1x8x8xbf16>
    %c0_18 = arith.constant 0 : index
    %c0_19 = arith.constant 0 : index
    %c0_20 = arith.constant 0 : index
    %c0_21 = arith.constant 0 : index
    %28 = vector.load %arg14[%c0_18, %c0_19, %c0_20, %c0_21] : memref<1x1x8x8xbf16, #tpu.memory_space<vmem>>, vector<1x1x8x8xbf16>
    %29 = vector.shape_cast %28 : vector<1x1x8x8xbf16> to vector<1x8x8xbf16>
    %30 = vector.shape_cast %27 : vector<1x8x8xbf16> to vector<1x1x8x8xbf16>
    tpu.vector_store %arg14[%c0_18, %c0_19, %c0_20, %c0_21], %30 {strides = array<i32>} : memref<1x1x8x8xbf16, #tpu.memory_space<vmem>>, vector<1x1x8x8xbf16>,
    %31 = arith.truncf %26 : vector<1x8x8xf32> to vector<1x8x8xbf16>
    "tpu.trace_start"() <{level = 10 : i32, message = "bqk,bkd->bqd"}> : () -> ()
    %cst_22 = arith.constant dense<0.000000e+00> : vector<1x8x32xf32>
    %32 = tpu.matmul %31, %15, %cst_22 {dimension_numbers = #tpu.dot_dimension_numbers<[2], [1], [1], [2], [0, 0, 0, 1, 1, 2], [0], [0]>} : vector<1x8x8xbf16>, vector<1x8x32xbf16>, vector<1x8x32xf32> -> vector<1x8x32xf32>
    "tpu.trace_stop"() : () -> ()
    %33 = arith.addf %16, %32 : vector<1x8x32xf32>
    %34 = arith.truncf %33 : vector<1x8x32xf32> to vector<1x8x32xbf16>
    %35 = vector.shape_cast %34 : vector<1x8x32xbf16> to vector<8x32xbf16>
    %c0_23 = arith.constant 0 : index
    %c0_24 = arith.constant 0 : index
    %36 = vector.load %arg8[%c0_23, %c0_24] : memref<32x32xbf16, #tpu.memory_space<vmem>>, vector<32x32xbf16>
    %cst_25 = arith.constant dense<0.000000e+00> : vector<8x32xf32>
    %37 = tpu.matmul %35, %36, %cst_25 {dimension_numbers = #tpu.dot_dimension_numbers<[1], [0], [0], [1], [0, 0, 1, 1], [], []>} : vector<8x32xbf16>, vector<32x32xbf16>, vector<8x32xf32> -> vector<8x32xf32>
    %c0_26 = arith.constant 0 : index
    %c0_27 = arith.constant 0 : index
    %38 = vector.load %arg12[%c0_26, %c0_27] : memref<1x32xf32, #tpu.memory_space<vmem>>, vector<1x32xf32>
    %39 = vector.broadcast %38 : vector<1x32xf32> to vector<8x32xf32>
    %40 = arith.addf %37, %39 : vector<8x32xf32>
    %41 = vector.shape_cast %40 : vector<8x32xf32> to vector<1x8x32xf32>
    %c0_28 = arith.constant 0 : index
    %c0_29 = arith.constant 0 : index
    %c0_30 = arith.constant 0 : index
    %42 = vector.load %arg13[%c0_28, %c0_29, %c0_30] : memref<1x8x32xf32, #tpu.memory_space<vmem>>, vector<1x8x32xf32>
    tpu.vector_store %arg13[%c0_28, %c0_29, %c0_30], %41 {strides = array<i32>} : memref<1x8x32xf32, #tpu.memory_space<vmem>>, vector<1x8x32xf32>,
    return
  }
  func.func @transform_0(%arg0: i32, %arg1: i32) -> (i32, i32, i32) {
    %c0_i32 = arith.constant 0 : i32
    %c0_i32_0 = arith.constant 0 : i32
    return %arg0, %arg1, %c0_i32 : i32, i32, i32
  }
  func.func @transform_1(%arg0: i32, %arg1: i32) -> (i32, i32, i32) {
    %c0_i32 = arith.constant 0 : i32
    %c0_i32_0 = arith.constant 0 : i32
    %c0_i32_1 = arith.constant 0 : i32
    return %arg0, %c0_i32, %c0_i32_0 : i32, i32, i32
  }
  func.func @transform_2(%arg0: i32, %arg1: i32) -> (i32, i32, i32) {
    %c0_i32 = arith.constant 0 : i32
    %c0_i32_0 = arith.constant 0 : i32
    %c0_i32_1 = arith.constant 0 : i32
    return %arg0, %c0_i32, %c0_i32_0 : i32, i32, i32
  }
  func.func @transform_3(%arg0: i32, %arg1: i32) -> (i32, i32) {
    %c0_i32 = arith.constant 0 : i32
    %c0_i32_0 = arith.constant 0 : i32
    %c0_i32_1 = arith.constant 0 : i32
    return %c0_i32, %c0_i32_0 : i32, i32
  }
  func.func @transform_4(%arg0: i32, %arg1: i32) -> (i32, i32) {
    %c0_i32 = arith.constant 0 : i32
    %c0_i32_0 = arith.constant 0 : i32
    %c0_i32_1 = arith.constant 0 : i32
    return %c0_i32, %c0_i32_0 : i32, i32
  }
  func.func @transform_5(%arg0: i32, %arg1: i32) -> (i32, i32) {
    %c0_i32 = arith.constant 0 : i32
    %c0_i32_0 = arith.constant 0 : i32
    %c0_i32_1 = arith.constant 0 : i32
    return %c0_i32, %c0_i32_0 : i32, i32
  }
  func.func @transform_6(%arg0: i32, %arg1: i32) -> (i32, i32) {
    %c0_i32 = arith.constant 0 : i32
    %c0_i32_0 = arith.constant 0 : i32
    %c0_i32_1 = arith.constant 0 : i32
    return %c0_i32, %c0_i32_0 : i32, i32
  }
  func.func @transform_7(%arg0: i32, %arg1: i32) -> (i32, i32) {
    %c0_i32 = arith.constant 0 : i32
    %c0_i32_0 = arith.constant 0 : i32
    %c0_i32_1 = arith.constant 0 : i32
    return %c0_i32, %c0_i32_0 : i32, i32
  }
  func.func @transform_8(%arg0: i32, %arg1: i32) -> (i32, i32) {
    %c0_i32 = arith.constant 0 : i32
    %c0_i32_0 = arith.constant 0 : i32
    %c0_i32_1 = arith.constant 0 : i32
    return %c0_i32, %c0_i32_0 : i32, i32
  }
  func.func @transform_9(%arg0: i32, %arg1: i32) -> (i32, i32) {
    %c0_i32 = arith.constant 0 : i32
    %c0_i32_0 = arith.constant 0 : i32
    %c0_i32_1 = arith.constant 0 : i32
    return %c0_i32, %c0_i32_0 : i32, i32
  }
  func.func @transform_10(%arg0: i32, %arg1: i32) -> (i32, i32) {
    %c0_i32 = arith.constant 0 : i32
    %c0_i32_0 = arith.constant 0 : i32
    %c0_i32_1 = arith.constant 0 : i32
    return %c0_i32, %c0_i32_0 : i32, i32
  }
  func.func @transform_11(%arg0: i32, %arg1: i32) -> (i32, i32, i32) {
    %c0_i32 = arith.constant 0 : i32
    %c0_i32_0 = arith.constant 0 : i32
    return %arg0, %arg1, %c0_i32 : i32, i32, i32
  }
  func.func @transform_12(%arg0: i32, %arg1: i32) -> (i32, i32, i32, i32) {
    %c0_i32 = arith.constant 0 : i32
    %c0_i32_0 = arith.constant 0 : i32
    %c0_i32_1 = arith.constant 0 : i32
    return %arg0, %c0_i32, %arg1, %c0_i32_0 : i32, i32, i32, i32
  }
}

module attributes {stable_mosaic.version = 11 : i64} {
  func.func @_imha_kernel(%arg0: i32, %arg1: i32, %arg2: memref<1x8x32xbf16, #tpu.memory_space<vmem>>, %arg3: memref<1x8x32xbf16, #tpu.memory_space<vmem>>, %arg4: memref<1x8x32xbf16, #tpu.memory_space<vmem>>, %arg5: memref<32x32xbf16, #tpu.memory_space<vmem>>, %arg6: memref<32x32xbf16, #tpu.memory_space<vmem>>, %arg7: memref<32x32xbf16, #tpu.memory_space<vmem>>, %arg8: memref<32x32xbf16, #tpu.memory_space<vmem>>, %arg9: memref<1x32xf32, #tpu.memory_space<vmem>>, %arg10: memref<1x32xf32, #tpu.memory_space<vmem>>, %arg11: memref<1x32xf32, #tpu.memory_space<vmem>>, %arg12: memref<1x32xf32, #tpu.memory_space<vmem>>, %arg13: memref<1x8x32xf32, #tpu.memory_space<vmem>>, %arg14: memref<1x1x8x8xbf16, #tpu.memory_space<vmem>>, %arg15: memref<1x8x32xbf16, #tpu.memory_space<vmem>>, %arg16: memref<1x8x32xbf16, #tpu.memory_space<vmem>>) attributes {dimension_semantics = [#tpu.dimension_semantics<parallel>, #tpu.dimension_semantics<arbitrary>], iteration_bounds = array<i64: 2, 1>, scalar_prefetch = 0 : i64, scratch_operands = 2 : i64, tpu.core_type = #tpu.core_type<tc>, window_params = [{transform_indices = @transform_0, window_bounds = array<i64: 1, 8, 32>}, {transform_indices = @transform_1, window_bounds = array<i64: 1, 8, 32>}, {transform_indices = @transform_2, window_bounds = array<i64: 1, 8, 32>}, {pipeline_mode = #tpu.pipeline_mode<synchronous>, transform_indices = @transform_3, window_bounds = array<i64: 32, 32>}, {pipeline_mode = #tpu.pipeline_mode<synchronous>, transform_indices = @transform_4, window_bounds = array<i64: 32, 32>}, {pipeline_mode = #tpu.pipeline_mode<synchronous>, transform_indices = @transform_5, window_bounds = array<i64: 32, 32>}, {pipeline_mode = #tpu.pipeline_mode<synchronous>, transform_indices = @transform_6, window_bounds = array<i64: 32, 32>}, {pipeline_mode = #tpu.pipeline_mode<synchronous>, transform_indices = @transform_7, window_bounds = array<i64: 1, 32>}, {pipeline_mode = #tpu.pipeline_mode<synchronous>, transform_indices = @transform_8, window_bounds = array<i64: 1, 32>}, {pipeline_mode = #tpu.pipeline_mode<synchronous>, transform_indices = @transform_9, window_bounds = array<i64: 1, 32>}, {pipeline_mode = #tpu.pipeline_mode<synchronous>, transform_indices = @transform_10, window_bounds = array<i64: 1, 32>}, {transform_indices = @transform_11, window_bounds = array<i64: 1, 8, 32>}, {transform_indices = @transform_12, window_bounds = array<i64: 1, 1, 8, 8>}]} {
    %c0 = arith.constant 0 : index
    %c0_0 = arith.constant 0 : index
    %c0_1 = arith.constant 0 : index
    %0 = vector.load %arg2[%c0, %c0_0, %c0_1] : memref<1x8x32xbf16, #tpu.memory_space<vmem>>, vector<1x8x32xbf16>
    %c0_i32 = arith.constant 0 : i32
    %1 = arith.cmpi eq, %arg1, %c0_i32 : i32
    %2 = arith.extui %1 : i1 to i32
    %c0_i32_2 = arith.constant 0 : i32
    %3 = arith.cmpi ne, %2, %c0_i32_2 : i32
    scf.if %3 {
      %c0_31 = arith.constant 0 : index
      %c0_32 = arith.constant 0 : index
      %c0_33 = arith.constant 0 : index
      %43 = vector.load %arg3[%c0_31, %c0_32, %c0_33] : memref<1x8x32xbf16, #tpu.memory_space<vmem>>, vector<1x8x32xbf16>
      %44 = vector.shape_cast %43 : vector<1x8x32xbf16> to vector<8x32xbf16>
      %c0_34 = arith.constant 0 : index
      %c0_35 = arith.constant 0 : index
      %c0_36 = arith.constant 0 : index
      %45 = vector.load %arg4[%c0_34, %c0_35, %c0_36] : memref<1x8x32xbf16, #tpu.memory_space<vmem>>, vector<1x8x32xbf16>
      %46 = vector.shape_cast %45 : vector<1x8x32xbf16> to vector<8x32xbf16>
      %c0_37 = arith.constant 0 : index
      %c0_38 = arith.constant 0 : index
      %47 = vector.load %arg6[%c0_37, %c0_38] : memref<32x32xbf16, #tpu.memory_space<vmem>>, vector<32x32xbf16>
      %cst_39 = arith.constant dense<0.000000e+00> : vector<8x32xf32>
      %48 = tpu.matmul %44, %47, %cst_39 {dimension_numbers = #tpu.dot_dimension_numbers<[1], [0], [0], [1], [0, 0, 1, 1], [], []>} : vector<8x32xbf16>, vector<32x32xbf16>, vector<8x32xf32> -> vector<8x32xf32>
      %c0_40 = arith.constant 0 : index
      %c0_41 = arith.constant 0 : index
      %49 = vector.load %arg10[%c0_40, %c0_41] : memref<1x32xf32, #tpu.memory_space<vmem>>, vector<1x32xf32>
      %50 = vector.broadcast %49 : vector<1x32xf32> to vector<8x32xf32>
      %51 = arith.addf %48, %50 : vector<8x32xf32>
      %c0_42 = arith.constant 0 : index
      %c0_43 = arith.constant 0 : index
      %52 = vector.load %arg7[%c0_42, %c0_43] : memref<32x32xbf16, #tpu.memory_space<vmem>>, vector<32x32xbf16>
      %cst_44 = arith.constant dense<0.000000e+00> : vector<8x32xf32>
      %53 = tpu.matmul %46, %52, %cst_44 {dimension_numbers = #tpu.dot_dimension_numbers<[1], [0], [0], [1], [0, 0, 1, 1], [], []>} : vector<8x32xbf16>, vector<32x32xbf16>, vector<8x32xf32> -> vector<8x32xf32>
      %c0_45 = arith.constant 0 : index
      %c0_46 = arith.constant 0 : index
      %54 = vector.load %arg11[%c0_45, %c0_46] : memref<1x32xf32, #tpu.memory_space<vmem>>, vector<1x32xf32>
      %55 = vector.broadcast %54 : vector<1x32xf32> to vector<8x32xf32>
      %56 = arith.addf %53, %55 : vector<8x32xf32>
      %57 = vector.shape_cast %51 : vector<8x32xf32> to vector<1x8x32xf32>
      %58 = arith.truncf %57 : vector<1x8x32xf32> to vector<1x8x32xbf16>
      %c0_47 = arith.constant 0 : index
      %c0_48 = arith.constant 0 : index
      %c0_49 = arith.constant 0 : index
      %59 = vector.load %arg15[%c0_47, %c0_48, %c0_49] : memref<1x8x32xbf16, #tpu.memory_space<vmem>>, vector<1x8x32xbf16>
      tpu.vector_store %arg15[%c0_47, %c0_48, %c0_49], %58 {strides = array<i32>} : memref<1x8x32xbf16, #tpu.memory_space<vmem>>, vector<1x8x32xbf16>,
      %60 = vector.shape_cast %56 : vector<8x32xf32> to vector<1x8x32xf32>
      %61 = arith.truncf %60 : vector<1x8x32xf32> to vector<1x8x32xbf16>
      %c0_50 = arith.constant 0 : index
      %c0_51 = arith.constant 0 : index
      %c0_52 = arith.constant 0 : index
      %62 = vector.load %arg16[%c0_50, %c0_51, %c0_52] : memref<1x8x32xbf16, #tpu.memory_space<vmem>>, vector<1x8x32xbf16>
      tpu.vector_store %arg16[%c0_50, %c0_51, %c0_52], %61 {strides = array<i32>} : memref<1x8x32xbf16, #tpu.memory_space<vmem>>, vector<1x8x32xbf16>,
    } else {
    }
    %4 = vector.shape_cast %0 : vector<1x8x32xbf16> to vector<8x32xbf16>
    %c0_3 = arith.constant 0 : index
    %c0_4 = arith.constant 0 : index
    %5 = vector.load %arg5[%c0_3, %c0_4] : memref<32x32xbf16, #tpu.memory_space<vmem>>, vector<32x32xbf16>
    %cst = arith.constant dense<0.000000e+00> : vector<8x32xf32>
    %6 = tpu.matmul %4, %5, %cst {dimension_numbers = #tpu.dot_dimension_numbers<[1], [0], [0], [1], [0, 0, 1, 1], [], []>} : vector<8x32xbf16>, vector<32x32xbf16>, vector<8x32xf32> -> vector<8x32xf32>
    %c0_5 = arith.constant 0 : index
    %c0_6 = arith.constant 0 : index
    %7 = vector.load %arg9[%c0_5, %c0_6] : memref<1x32xf32, #tpu.memory_space<vmem>>, vector<1x32xf32>
    %8 = vector.broadcast %7 : vector<1x32xf32> to vector<8x32xf32>
    %9 = arith.addf %6, %8 : vector<8x32xf32>
    %cst_7 = arith.constant 0.176776692 : f32
    %10 = vector.broadcast %cst_7 : f32 to vector<8x32xf32>
    %11 = arith.mulf %9, %10 : vector<8x32xf32>
    %12 = arith.truncf %11 : vector<8x32xf32> to vector<8x32xbf16>
    %13 = vector.shape_cast %12 : vector<8x32xbf16> to vector<1x8x32xbf16>
    %c0_8 = arith.constant 0 : index
    %c0_9 = arith.constant 0 : index
    %c0_10 = arith.constant 0 : index
    %14 = vector.load %arg15[%c0_8, %c0_9, %c0_10] : memref<1x8x32xbf16, #tpu.memory_space<vmem>>, vector<1x8x32xbf16>
    %c0_11 = arith.constant 0 : index
    %c0_12 = arith.constant 0 : index
    %c0_13 = arith.constant 0 : index
    %15 = vector.load %arg16[%c0_11, %c0_12, %c0_13] : memref<1x8x32xbf16, #tpu.memory_space<vmem>>, vector<1x8x32xbf16>
    %cst_14 = arith.constant 0.000000e+00 : f32
    %16 = vector.broadcast %cst_14 : f32 to vector<1x8x32xf32>
    "tpu.trace_start"() <{level = 10 : i32, message = "bqd,bkd->bqk"}> : () -> ()
    %cst_15 = arith.constant dense<0.000000e+00> : vector<1x8x8xf32>
    %17 = tpu.matmul %13, %14, %cst_15 {dimension_numbers = #tpu.dot_dimension_numbers<[2], [2], [1], [1], [0, 0, 0, 1, 1, 1], [0], [0]>} : vector<1x8x32xbf16>, vector<1x8x32xbf16>, vector<1x8x8xf32> -> vector<1x8x8xf32>
    "tpu.trace_stop"() : () -> ()
    %cst_16 = arith.constant dense<0xFF800000> : vector<1x8xf32>
    %18 = vector.multi_reduction <maximumf>, %17, %cst_16 [2] : vector<1x8x8xf32> to vector<1x8xf32>
    %19 = vector.shape_cast %18 : vector<1x8xf32> to vector<1x8x1xf32>
    %20 = vector.broadcast %19 : vector<1x8x1xf32> to vector<1x8x8xf32>
    %21 = arith.subf %17, %20 : vector<1x8x8xf32>
    %22 = math.exp %21 : vector<1x8x8xf32>
    %cst_17 = arith.constant dense<0.000000e+00> : vector<1x8xf32>
    %23 = vector.multi_reduction <add>, %22, %cst_17 [2] : vector<1x8x8xf32> to vector<1x8xf32>
    %24 = vector.shape_cast %23 : vector<1x8xf32> to vector<1x8x1xf32>
    %25 = vector.broadcast %24 : vector<1x8x1xf32> to vector<1x8x8xf32>
    %26 = arith.divf %22, %25 : vector<1x8x8xf32>
    %27 = arith.truncf %26 : vector<1x8x8xf32> to vector<1x8x8xbf16>
    %c0_18 = arith.constant 0 : index
    %c0_19 = arith.constant 0 : index
    %c0_20 = arith.constant 0 : index
    %c0_21 = arith.constant 0 : index
    %28 = vector.load %arg14[%c0_18, %c0_19, %c0_20, %c0_21] : memref<1x1x8x8xbf16, #tpu.memory_space<vmem>>, vector<1x1x8x8xbf16>
    %29 = vector.shape_cast %28 : vector<1x1x8x8xbf16> to vector<1x8x8xbf16>
    %30 = vector.shape_cast %27 : vector<1x8x8xbf16> to vector<1x1x8x8xbf16>
    tpu.vector_store %arg14[%c0_18, %c0_19, %c0_20, %c0_21], %30 {strides = array<i32>} : memref<1x1x8x8xbf16, #tpu.memory_space<vmem>>, vector<1x1x8x8xbf16>,
    %31 = arith.truncf %26 : vector<1x8x8xf32> to vector<1x8x8xbf16>
    "tpu.trace_start"() <{level = 10 : i32, message = "bqk,bkd->bqd"}> : () -> ()
    %cst_22 = arith.constant dense<0.000000e+00> : vector<1x8x32xf32>
    %32 = tpu.matmul %31, %15, %cst_22 {dimension_numbers = #tpu.dot_dimension_numbers<[2], [1], [1], [2], [0, 0, 0, 1, 1, 2], [0], [0]>} : vector<1x8x8xbf16>, vector<1x8x32xbf16>, vector<1x8x32xf32> -> vector<1x8x32xf32>
    "tpu.trace_stop"() : () -> ()
    %33 = arith.addf %16, %32 : vector<1x8x32xf32>
    %34 = arith.truncf %33 : vector<1x8x32xf32> to vector<1x8x32xbf16>
    %35 = vector.shape_cast %34 : vector<1x8x32xbf16> to vector<8x32xbf16>
    %c0_23 = arith.constant 0 : index
    %c0_24 = arith.constant 0 : index
    %36 = vector.load %arg8[%c0_23, %c0_24] : memref<32x32xbf16, #tpu.memory_space<vmem>>, vector<32x32xbf16>
    %cst_25 = arith.constant dense<0.000000e+00> : vector<8x32xf32>
    %37 = tpu.matmul %35, %36, %cst_25 {dimension_numbers = #tpu.dot_dimension_numbers<[1], [0], [0], [1], [0, 0, 1, 1], [], []>} : vector<8x32xbf16>, vector<32x32xbf16>, vector<8x32xf32> -> vector<8x32xf32>
    %c0_26 = arith.constant 0 : index
    %c0_27 = arith.constant 0 : index
    %38 = vector.load %arg12[%c0_26, %c0_27] : memref<1x32xf32, #tpu.memory_space<vmem>>, vector<1x32xf32>
    %39 = vector.broadcast %38 : vector<1x32xf32> to vector<8x32xf32>
    %40 = arith.addf %37, %39 : vector<8x32xf32>
    %41 = vector.shape_cast %40 : vector<8x32xf32> to vector<1x8x32xf32>
    %c0_28 = arith.constant 0 : index
    %c0_29 = arith.constant 0 : index
    %c0_30 = arith.constant 0 : index
    %42 = vector.load %arg13[%c0_28, %c0_29, %c0_30] : memref<1x8x32xf32, #tpu.memory_space<vmem>>, vector<1x8x32xf32>
    tpu.vector_store %arg13[%c0_28, %c0_29, %c0_30], %41 {strides = array<i32>} : memref<1x8x32xf32, #tpu.memory_space<vmem>>, vector<1x8x32xf32>,
    return
  }
  func.func @transform_0(%arg0: i32, %arg1: i32) -> (i32, i32, i32) {
    %c0_i32 = arith.constant 0 : i32
    %c0_i32_0 = arith.constant 0 : i32
    return %arg0, %arg1, %c0_i32 : i32, i32, i32
  }
  func.func @transform_1(%arg0: i32, %arg1: i32) -> (i32, i32, i32) {
    %c0_i32 = arith.constant 0 : i32
    %c0_i32_0 = arith.constant 0 : i32
    %c0_i32_1 = arith.constant 0 : i32
    return %arg0, %c0_i32, %c0_i32_0 : i32, i32, i32
  }
  func.func @transform_2(%arg0: i32, %arg1: i32) -> (i32, i32, i32) {
    %c0_i32 = arith.constant 0 : i32
    %c0_i32_0 = arith.constant 0 : i32
    %c0_i32_1 = arith.constant 0 : i32
    return %arg0, %c0_i32, %c0_i32_0 : i32, i32, i32
  }
  func.func @transform_3(%arg0: i32, %arg1: i32) -> (i32, i32) {
    %c0_i32 = arith.constant 0 : i32
    %c0_i32_0 = arith.constant 0 : i32
    %c0_i32_1 = arith.constant 0 : i32
    return %c0_i32, %c0_i32_0 : i32, i32
  }
  func.func @transform_4(%arg0: i32, %arg1: i32) -> (i32, i32) {
    %c0_i32 = arith.constant 0 : i32
    %c0_i32_0 = arith.constant 0 : i32
    %c0_i32_1 = arith.constant 0 : i32
    return %c0_i32, %c0_i32_0 : i32, i32
  }
  func.func @transform_5(%arg0: i32, %arg1: i32) -> (i32, i32) {
    %c0_i32 = arith.constant 0 : i32
    %c0_i32_0 = arith.constant 0 : i32
    %c0_i32_1 = arith.constant 0 : i32
    return %c0_i32, %c0_i32_0 : i32, i32
  }
  func.func @transform_6(%arg0: i32, %arg1: i32) -> (i32, i32) {
    %c0_i32 = arith.constant 0 : i32
    %c0_i32_0 = arith.constant 0 : i32
    %c0_i32_1 = arith.constant 0 : i32
    return %c0_i32, %c0_i32_0 : i32, i32
  }
  func.func @transform_7(%arg0: i32, %arg1: i32) -> (i32, i32) {
    %c0_i32 = arith.constant 0 : i32
    %c0_i32_0 = arith.constant 0 : i32
    %c0_i32_1 = arith.constant 0 : i32
    return %c0_i32, %c0_i32_0 : i32, i32
  }
  func.func @transform_8(%arg0: i32, %arg1: i32) -> (i32, i32) {
    %c0_i32 = arith.constant 0 : i32
    %c0_i32_0 = arith.constant 0 : i32
    %c0_i32_1 = arith.constant 0 : i32
    return %c0_i32, %c0_i32_0 : i32, i32
  }
  func.func @transform_9(%arg0: i32, %arg1: i32) -> (i32, i32) {
    %c0_i32 = arith.constant 0 : i32
    %c0_i32_0 = arith.constant 0 : i32
    %c0_i32_1 = arith.constant 0 : i32
    return %c0_i32, %c0_i32_0 : i32, i32
  }
  func.func @transform_10(%arg0: i32, %arg1: i32) -> (i32, i32) {
    %c0_i32 = arith.constant 0 : i32
    %c0_i32_0 = arith.constant 0 : i32
    %c0_i32_1 = arith.constant 0 : i32
    return %c0_i32, %c0_i32_0 : i32, i32
  }
  func.func @transform_11(%arg0: i32, %arg1: i32) -> (i32, i32, i32) {
    %c0_i32 = arith.constant 0 : i32
    %c0_i32_0 = arith.constant 0 : i32
    return %arg0, %arg1, %c0_i32 : i32, i32, i32
  }
  func.func @transform_12(%arg0: i32, %arg1: i32) -> (i32, i32, i32, i32) {
    %c0_i32 = arith.constant 0 : i32
    %c0_i32_0 = arith.constant 0 : i32
    %c0_i32_1 = arith.constant 0 : i32
    return %arg0, %c0_i32, %arg1, %c0_i32_0 : i32, i32, i32, i32
  }
}

</mosaic_0001>

<bundles_post_ra>
// kernel: tpu_custom_call.1
= control target key start
LH: loop header
LB: loop body
LE: loop exit
PB: predicated region body
PF: predicated region fallthrough
CT: control target
= control target key end

     0   :  { %s2179_s0 = inlined_call_operand.hbm [shape: bf16[2,8,32], index: 0, kind: input, shape index: {}]   ;;  %s2180_s1 = inlined_call_operand.hbm [shape: bf16[2,8,32], index: 1, kind: input, shape index: {}]   ;;  %s2181_s2 = inlined_call_operand.hbm [shape: bf16[2,8,32], index: 2, kind: input, shape index: {}]   ;;  %s2182_s3 = inlined_call_operand.hbm [shape: bf16[32,32], index: 3, kind: input, shape index: {}]   ;;  %s2183_s4 = inlined_call_operand.hbm [shape: bf16[32,32], index: 4, kind: input, shape index: {}]   ;;  %s2184_s5 = inlined_call_operand.hbm [shape: bf16[32,32], index: 5, kind: input, shape index: {}]   ;;  %s2185_s6 = inlined_call_operand.hbm [shape: bf16[32,32], index: 6, kind: input, shape index: {}]   ;;  %s2186_s7 = inlined_call_operand.vmem [shape: f32[1,32], index: 7, kind: input, shape index: {}]   ;;  %s2187_s8 = inlined_call_operand.vmem [shape: f32[1,32], index: 8, kind: input, shape index: {}]   ;;  %s2188_s9 = inlined_call_operand.vmem [shape: f32[1,32], index: 9, kind: input, shape index: {}]   ;;  %s2189_s10 = inlined_call_operand.vmem [shape: f32[1,32], index: 10, kind: input, shape index: {}]   ;;  %s2190_s11 = inlined_call_operand.hbm [shape: f32[2,8,32], index: 11, kind: output, shape index: {0}]   ;;  %s2191_s12 = inlined_call_operand.hbm [shape: bf16[2,1,8,8], index: 12, kind: output, shape index: {1}]  }
   0x1   :  { %2211 = sst [smem:[#allocation32_spill]] %s2180_s1 }
   0x2   :  { %2212 = sst [smem:[#allocation33_spill]] %s2182_s3 }
   0x3   :  { %2213 = sst [smem:[#allocation34_spill]] %s2183_s4 }
   0x4   :  { %2214 = sst [smem:[#allocation35_spill]] %s2184_s5 }
   0x5   :  { %2215 = sst [smem:[#allocation36_spill]] %s2189_s10 }
   0x6   :  { %2216 = sst [smem:[#allocation37_spill]] %s2190_s11 }
   0x7   :  { %2217 = sst [smem:[#allocation38_spill]] %s2191_s12 }
   0x8   :  { %18 = vsyncpa [#allocation5], 0 }
   0x9   :  { %20 = vsyncpa [#allocation5 + $0x1], 0 }
   0xa   :  { %21 = vsyncpa [#allocation8], 0 }
   0xb   :  { %23 = vsyncpa [#allocation8 + $0x1], 0 }
   0xc   :  { %24 = vsyncpa [#allocation11], 0 }
   0xd   :  { %25 = vsyncpa [#allocation14], 0 }
   0xe   :  { %26 = vsyncpa [#allocation6], 0 }
   0xf   :  { %28 = vsyncpa [#allocation6 + $0x1], 0 }
  0x10   :  { %29 = vsyncpa [#allocation18], 0 }
  0x11   :  { %31 = vsyncpa [#allocation18 + $0x1], 0  ;;  %s1841_s21 = smov 0   ;;  %s1843_s22 = smov 0  }
  0x12   :  { %s1845_s23 = smov 0   ;;  %s1847_s24 = smov 0  }
  0x13   :  { %s1849_s25 = smov 0   ;;  %s1851_s26 = smov 0  }
  0x14 LB: > { %2218 = sst [smem:[#allocation25_spill]] %s1741_s21  ;;  %s1872_s27 = sadd.s32 4294967295, %s1761_s26   ;;  %s1761_s26 = sphi %s1851_s26, %s37_s26   ;;  %s1757_s25 = sphi %s1849_s25, %s2259_s25   ;;  %s1753_s24 = sphi %s1847_s24, %s2258_s24   ;;  %s1749_s23 = sphi %s1845_s23, %s2262_s23   ;;  %s1745_s22 = sphi %s1843_s22, %s2261_s22   ;;  %s1741_s21 = sphi %s1841_s21, %s2260_s21  }
  0x15   : > { %2219 = sst [smem:[#allocation26_spill]] %s1757_s25  ;;  %p1211_p0 = scmp.ge.s32.totalorder %s1761_s26, 1 }
  0x16   : > { %2220 = sst [smem:[#allocation27_spill]] %s1761_s26  ;;  %p2204_p1 = scmp.eq.s32.totalorder %s1872_s27, 0 }
  0x17   : > { %p358_p2 = scmp.lt.s32.totalorder %s1761_s26, 3  ;;  %s1763_s29 = smov [#allocation10]  }
  0x18   : > { %s370_s30 = sshll.u32 %s1763_s29, 4  ;;  %s1764_s14 = smov [#allocation13]   ;;  %s371_s30 = int_to_ptr.vmem [resolvable:$true] %s370_s30 }
  0x19   : > { %p1877_p3 = pnand %p1211_p0, %p358_p2  ;;  %s396_s15 = sshll.u32 %s1764_s14, 4  ;;  %s397_s15 = int_to_ptr.vmem [resolvable:$true] %s396_s15 }
  0x1a   : > { %s1462_s16 = scalar_lea.vmem %s371_s30, 256  ;;  %p1470_p11 = scmp.lt.s32.totalorder %s371_s30, %s371_s30 }
  0x1b   : > { %p1343_p4 = pneg %p1877_p3  ;;  %p1463_p8 = scmp.ne.s32.totalorder %s371_s30, %s1462_s16 }
  0x1c   : > { %p1471_p12 = scmp.lt.s32.totalorder %s1462_s16, %s1462_s16 }
  0x1d   : > { %p1886_p6 = pnand %p1343_p4, %p2204_p1 }
  0x1e   : > { %p1472_p13 = por %p1471_p12, %p1470_p11 }
  0x1f   : > { %p2205_p7 = pneg %p1886_p6 }
  0x21   : > { %p1465_p9 = pnand %p1463_p8, %p2205_p7 }
  0x23   : > { %p1466_p10 = pneg %p1465_p9 }
  0x25   : > { %p1473_p0 = pnand %p1472_p13, %p1466_p10 }
  0x27   : > { %1476 = shalt.err (!%p1473_p0)
}
  0x28   : > { %s2192_s17 = smov 64   ;;  %s2194_s18 = smov 4  }
  0x29   : > { %s2223_s3 = sld [smem:[#allocation33_spill]]  ;;  %s1488_s29 = scalar_lea.vmem %s397_s15, 256 }
  0x2a   : > { %p1489_p2 = scmp.ne.s32.totalorder %s397_s15, %s1488_s29  ;;  %p1496_p9 = scmp.lt.s32.totalorder %s397_s15, %s397_s15 }
  0x2b   : > { %p1497_p10 = scmp.lt.s32.totalorder %s1488_s29, %s1488_s29 }
  0x2c   : > { %p1491_p4 = pnand %p1489_p2, %p2205_p7 }
  0x2d   : > { %p1498_p11 = por %p1497_p10, %p1496_p9 }
  0x2e   : > { %p1492_p8 = pneg %p1491_p4 }
  0x2f   : > { %1346 = dma.hbm_to_vmem [thread:$0]  (!%p1886_p6), %s2223_s3, 256, %s371_s30, [#allocation11], %s2192_s17, %s2192_s17, %s2194_s18  }
  0x30   : > { %p1499_p12 = pnand %p1498_p11, %p1492_p8 }
  0x32   : > { %1502 = shalt.err (!%p1499_p12)
}
  0x33   : > { %s2224_s5 = sld [smem:[#allocation35_spill]]  ;;  %s1210_s30 = sadd.s32 4294967294, %s1761_s26  }
  0x34   : > { %s49_s19 = sadd.s32 1, %s1757_s25  ;;  %s58_s20 = sadd.s32 1, %s1749_s23 }
  0x35   : > { %p51_p13 = scmp.ge.s32.totalorder %s49_s19, 2  ;;  %p65_p0 = scmp.ne.s32.totalorder %s1749_s23, %s1745_s22 }
  0x36   : > { %p66_p2 = scmp.eq.s32.totalorder %s1761_s26, 0  ;;  %p71_p8 = scmp.ne.s32.totalorder %s1745_s22, %s1741_s21 }
  0x37   : > { %s2264_s19 = smov (%p51_p13, %s49_s19), 0  ;;  %p317_p9 = scmp.eq.s32.totalorder %s1872_s27, 1 }
  0x38   : > { %2225 = sst [smem:[#allocation28_spill]] %s2264_s19  ;;  %p1922_p4 = por %p66_p2, %p65_p0 }
  0x39   : > { %1352 = dma.hbm_to_vmem [thread:$0]  (!%p1886_p6), %s2224_s5, 256, %s397_s15, [#allocation14], %s2192_s17, %s2192_s17, %s2194_s18  }
  0x3a   : > { %s53_s15 = ssub.s32 %s1757_s25, %s2264_s19  ;;  %p1933_p11 = por %p2204_p1, %p71_p8 }
  0x3b   : > { %p56_p10 = scmp.eq.s32.totalorder %s53_s15, 0  ;;  %p1937_p12 = por %p317_p9, %p65_p0 }
  0x3c   : > { %p323_p13 = scmp.eq.s32.totalorder %s1210_s30, 1  ;;  %p1377_p5 = scmp.lt.s32.totalorder %s1761_s26, 2 }
  0x3d   : > { %s2228_s16 = scalar_select %p1937_p12, 1, 0 }
  0x3e   : > { %s1942_s17 = scalar_select %p56_p10, %s1749_s23, %s58_s20  }
  0x3f   : > { %2229 = sst [smem:[#allocation29_spill]] %s2228_s16  ;;  %p1944_p2 = por %p323_p13, %p71_p8 }
  0x40   : > { %2230 = sst [smem:[#allocation30_spill]] %s1942_s17  ;;  %s2201_s3 = sand.u32 1, %s1749_s23  }
  0x41   : > { %s2231_s18 = scalar_select %p1944_p2, 1, 0 }
  0x42   : > { %s1951_s5 = sshll.u32 %s1757_s25, 6  ;;  %s1955_s15 = sshll.u32 %s2201_s3, 2 }
  0x43   : > { %2232 = sst [smem:[#allocation31_spill]] %s2231_s18  ;;  %p1959_p0 = pnand %p1377_p5, %p1922_p4 }
  0x44   : > { %s454_s30 = sand.u32 1, %s1761_s26   ;;  %s2234_s1 = sld [smem:[#allocation32_spill]] }
  0x45   : > { %s458_s21 = scalar_lea.vmem [#allocation7], %s1955_s15  ;;  %s1969_s11 = scalar_lea.sflag [#allocation8], %s454_s30 }
  0x46   : > { %s465_s25 = sshll.u32 %s458_s21, 4  ;;  %p2206_p8 = pneg %p1959_p0  ;;  %s466_s25 = int_to_ptr.vmem [resolvable:$true] %s465_s25 }
  0x47   : > { %s1516_s29 = scalar_lea.vmem %s466_s25, 64  ;;  %s1767_s3 = smov [#allocation7]  }
  0x48   : > { %p1517_p9 = scmp.ne.s32.totalorder %s466_s25, %s1516_s29  ;;  %s1521_s10 = sshll.u32 %s1767_s3, 4  ;;  %s1522_s10 = int_to_ptr.vmem [resolvable:$false] %s1521_s10 }
  0x49   : > { %s1523_s26 = scalar_lea.vmem %s1522_s10, 128  ;;  %p1524_p10 = scmp.lt.s32.totalorder %s466_s25, %s1522_s10 }
  0x4a   : > { %s463_s18 = scalar_lea.hbm %s2234_s1, %s1951_s5  ;;  %p1519_p5 = pnand %p1517_p9, %p2206_p8 }
  0x4b   : > { %p1525_p13 = scmp.lt.s32.totalorder %s1523_s26, %s1516_s29 }
  0x4c   : > { %p1520_p4 = pneg %p1519_p5 }
  0x4d   : > { %p1526_p1 = por %p1525_p13, %p1524_p10 }
  0x4f   : > { %p1527_p7 = pnand %p1526_p1, %p1520_p4 }
  0x51   : > { %1530 = shalt.err (!%p1527_p7)
}
  0x52   : > { %1362 = dma.hbm_to_vmem [thread:$0]  (!%p1959_p0), %s463_s18, 64, %s466_s25, %s1969_s11  }
  0x53   : > { %s1768_s21 = smov [#allocation12]   ;;  %s1769_s30 = smov [#allocation15]  }
  0x54   : > { %s383_s17 = sshll.u32 %s1768_s21, 4  ;;  %s409_s20 = sshll.u32 %s1769_s30, 4  ;;  %s384_s17 = int_to_ptr.vmem [resolvable:$true] %s383_s17  ;;  %s410_s20 = int_to_ptr.vmem [resolvable:$true] %s409_s20 }
  0x55   : > { %s1542_s1 = scalar_lea.vmem %s384_s17, 256  ;;  %p2235_p5 = pneg %p1886_p6 }
  0x56   : > { %p1543_p9 = scmp.ne.s32.totalorder %s384_s17, %s1542_s1  ;;  %p1550_p12 = scmp.lt.s32.totalorder %s384_s17, %s384_s17 }
  0x57   : > { %p1551_p10 = scmp.lt.s32.totalorder %s1542_s1, %s1542_s1 }
  0x58   : > { %p1545_p8 = pnand %p1543_p9, %p2235_p5 }
  0x59   : > { %p1552_p1 = por %p1551_p10, %p1550_p12 }
  0x5a   : > { %p1546_p2 = pneg %p1545_p8 }
  0x5c   : > { %p1553_p7 = pnand %p1552_p1, %p1546_p2 }
  0x5e   : > { %1556 = shalt.err (!%p1553_p7)
}
  0x5f   : > { %s2236_s3 = smov 4   ;;  %s2237_s10 = smov 64  }
  0x60   : > { %s2238_s4 = sld [smem:[#allocation34_spill]]  ;;  %s1568_s18 = scalar_lea.vmem %s410_s20, 256 }
  0x61   : > { %p1569_p4 = scmp.ne.s32.totalorder %s410_s20, %s1568_s18  ;;  %p2239_p8 = pmov %p2235_p5 }
  0x62   : > { %p1576_p12 = scmp.lt.s32.totalorder %s410_s20, %s410_s20  ;;  %p1577_p2 = scmp.lt.s32.totalorder %s1568_s18, %s1568_s18 }
  0x63   : > { %p1571_p13 = pnand %p1569_p4, %p2239_p8 }
  0x64   : > { %p1578_p5 = por %p1577_p2, %p1576_p12 }
  0x65   : > { %p1572_p9 = pneg %p1571_p13 }
  0x66   : > { %1349 = dma.hbm_to_vmem [thread:$0]  (!%p1886_p6), %s2238_s4, 256, %s384_s17, [#allocation11], %s2237_s10, %s2237_s10, %s2236_s3  }
  0x67   : > { %p1579_p10 = pnand %p1578_p5, %p1572_p9 }
  0x69   : > { %1582 = shalt.err (!%p1579_p10)
}
  0x6a   : > { %1355 = dma.hbm_to_vmem [thread:$0]  (!%p1886_p6), %s2185_s6, 256, %s410_s20, [#allocation14], %s2237_s10, %s2237_s10, %s2236_s3  }
  0x6b   : > { %s445_s30 = scalar_lea.hbm %s2179_s0, %s1951_s5  ;;  %s439_s25 = scalar_lea.vmem [#allocation4], %s1955_s15 }
  0x6c   : > { %s447_s26 = sshll.u32 %s439_s25, 4  ;;  %s481_s4 = scalar_lea.hbm %s2181_s2, %s1951_s5  ;;  %s448_s26 = int_to_ptr.vmem [resolvable:$true] %s447_s26 }
  0x6d   : > { %s2240_s12 = sand.u32 1, %s1749_s23   ;;  %s1596_s1 = scalar_lea.vmem %s448_s26, 64 }
  0x6e   : > { %s436_s16 = scalar_lea.sflag [#allocation5], %s2240_s12  ;;  %p1597_p1 = scmp.ne.s32.totalorder %s448_s26, %s1596_s1 }
  0x6f   : > { %p2241_p7 = pneg %p1959_p0  ;;  %s1770_s20 = smov [#allocation4]  }
  0x70   : > { %s1601_s3 = sshll.u32 %s1770_s20, 4  ;;  %s1602_s3 = int_to_ptr.vmem [resolvable:$false] %s1601_s3 }
  0x71   : > { %p1599_p4 = pnand %p1597_p1, %p2241_p7  ;;  %s1603_s10 = scalar_lea.vmem %s1602_s3, 128 }
  0x72   : > { %p1604_p6 = scmp.lt.s32.totalorder %s448_s26, %s1602_s3  ;;  %p1605_p13 = scmp.lt.s32.totalorder %s1603_s10, %s1596_s1 }
  0x73   : > { %p1600_p8 = pneg %p1599_p4 }
  0x74   : > { %p1606_p9 = por %p1605_p13, %p1604_p6 }
  0x76   : > { %p1607_p12 = pnand %p1606_p9, %p1600_p8 }
  0x78   : > { %1610 = shalt.err (!%p1607_p12)
}
  0x79   : > { %1359 = dma.hbm_to_vmem [thread:$0]  (!%p1959_p0), %s445_s30, 64, %s448_s26, %s436_s16  }
  0x7a   : > { %s476_s12 = scalar_lea.vmem [#allocation9], %s1955_s15  ;;  %p2242_p5 = pmov %p2241_p7 }
  0x7b   : > { %s483_s29 = sshll.u32 %s476_s12, 4  ;;  %s1771_s17 = smov [#allocation9]   ;;  %s484_s29 = int_to_ptr.vmem [resolvable:$true] %s483_s29 }
  0x7c   : > { %s1624_s21 = scalar_lea.vmem %s484_s29, 64  ;;  %s1629_s25 = sshll.u32 %s1771_s17, 4  ;;  %s1630_s25 = int_to_ptr.vmem [resolvable:$false] %s1629_s25 }
  0x7d   : > { %p1625_p2 = scmp.ne.s32.totalorder %s484_s29, %s1624_s21  ;;  %s1631_s13 = scalar_lea.vmem %s1630_s25, 128 }
  0x7e   : > { %p1632_p7 = scmp.lt.s32.totalorder %s484_s29, %s1630_s25  ;;  %p1633_p4 = scmp.lt.s32.totalorder %s1631_s13, %s1624_s21 }
  0x7f   : > { %p1627_p10 = pnand %p1625_p2, %p2242_p5 }
  0x80   : > { %p1634_p8 = por %p1633_p4, %p1632_p7 }
  0x81   : > { %p1628_p1 = pneg %p1627_p10 }
  0x83   : > { %p1635_p6 = pnand %p1634_p8, %p1628_p1 }
  0x85   : > { %1638 = shalt.err (!%p1635_p6)
}
  0x86   : > { %1365 = dma.hbm_to_vmem [thread:$0]  (!%p1959_p0), %s481_s4, 64, %s484_s29, %s1969_s11  }
  0x87   : > { %492 = sbr.rel (%p1877_p3) target bundleno = 1285 (0x505), region = 64  ;;  %s2032_s30 = sand.u32 (!%p1877_p3), 1, %s1745_s22  }
  0x88   : > { %s2035_s26 = sshll.u32 (!%p1877_p3), %s2032_s30, 2  ;;  %s495_s19 = scalar_lea.sflag (!%p1877_p3), [#allocation5], %s2032_s30 }
  0x89   : > { %s498_s18 = scalar_lea.vmem (!%p1877_p3), [#allocation4], %s2035_s26 }
  0x8c   : > { %1716 = dma.done.wait (%p1933_p11), %s495_s19, 64  }
  0x8d   : > { %1718 = vsyncadd (%p1933_p11), %s495_s19, 4294967232  ;;  %s503_s4 = sand.u32 1, %s1872_s27   ;;  %s507_s11 = scalar_lea.vmem [#allocation7], %s2035_s26 }
  0x8e   : > { %s504_s5 = scalar_lea.sflag [#allocation8], %s503_s4 }
  0x8f   : > { %1720 = dma.done.wait (%p1933_p11), %s504_s5, 128  }
  0x90   : > { %1722 = vsyncadd (%p1933_p11), %s504_s5, 4294967168  ;;  %s516_s28 = scalar_lea.vmem [#allocation9], %s2035_s26  ;;  %p2243_p3 = scmp.eq.s32.totalorder %s1872_s27, 0 }
  0x92   : > { %1724 = dma.done.wait (%p2243_p3), [#allocation11], 512   ;;  %p2244_p0 = pmov %p2243_p3 }
  0x94   : > { %1726 = vsyncadd (%p2244_p0), [#allocation11], 4294966784  ;;  %p2245_p13 = pmov %p2244_p0 }
  0x95   : > { %p2246_p9 = pmov %p2244_p0 }
  0x96   : > { %1728 = dma.done.wait (%p2245_p13), [#allocation14], 512  }
  0x97   : > { %1730 = vsyncadd (%p2246_p9), [#allocation14], 4294966784  ;;  %v1772_v0 = vmov 0.0   ;;  %vm1773_vm0 = vmmov 0   ;;  %v1439_v1 = vld [vmem:[#allocation12 + $0x8] sm:$0xff]   ;;  %v1440_v2 = vld [vmem:[#allocation12] sm:$0xff]  }
  0x98   : > { %1273 = vmatprep.subr.bf16.mxu0 %v1772_v0  ;;  %1277 = vmatprep.mubr.msk.bf16.mxu0 %vm1773_vm0, %v1772_v0  ;;  %v594_v3 = vld [vmem:[%s507_s11] sm:$0xf]  ;;  %vm619_vm1 = vcmask 261120   ;;  %v1441_v4 = vld [vmem:[#allocation10 + $0x8] sm:$0xff]   ;;  %v1442_v5 = vld [vmem:[#allocation10] sm:$0xff]   ;;  %vm730_vm2 = vcmask 257024  }
  0x99   : > { %1281 = vmatprep.subr.bf16.mxu1 %v1772_v0  ;;  %1285 = vmatprep.mubr.msk.bf16.mxu1 %vm1773_vm0, %v1772_v0  ;;  %v589_v6 = vld [vmem:[%s498_s18] sm:$0xf]  ;;  %v1444_v8 = vld [vmem:[#allocation13] sm:$0xff]   ;;  %v595_v9 = vld [vmem:[%s516_s28] sm:$0xf]  ;;  %vm869_vm3 = vcmask 1043456  }
  0x9a   : > { %1274 = vmatpush3.bf16.msra.mxu0 %v1439_v1  ;;  %v1443_v7 = vld [vmem:[#allocation13 + $0x8] sm:$0xff]   ;;  %v1233_v10 = vld [vmem:[%s2187_s8] ss:$0 sm:$0xff]  ;;  %vm851_vm4 = vcmask 64512   ;;  %v1445_v46 = vld [vmem:[#allocation15 + $0x8] sm:$0xff]   ;;  %vm864_vm5 = vcmask 60416  }
  0x9b   : > { %1275 = vmatprep.subr.bf16.mxu0 %v1772_v0  ;;  %1282 = vmatpush3.bf16.msra.mxu1 %v1443_v7  ;;  %v1241_v17 = vld [vmem:[%s2186_s7] ss:$0 sm:$0xff]  ;;  %s587_s12 = scalar_lea.vmem [#allocation17], %s2035_s26  ;;  %s2247_s29 = sld [smem:[#allocation29_spill]]  ;;  %v1446_v51 = vld [vmem:[#allocation15] sm:$0xff]  }
  0x9c   : > { %1283 = vmatprep.subr.bf16.mxu1 %v1772_v0  ;;  %v1237_v27 = vld [vmem:[%s2188_s9] ss:$0 sm:$0xff]  ;;  %s1254_s21 = sshll.u32 %s1753_s24, 6  ;;  %s1015_s17 = sshll.u32 %s587_s12, 4  ;;  %s1016_s17 = int_to_ptr.vmem [resolvable:$true] %s1015_s17 }
  0x9d   : > { %s2248_s16 = sld [smem:[#allocation38_spill]]  ;;  %s987_s19 = scalar_lea.sflag [#allocation18], %s2032_s30 }
  0x9e   : > { %1276 = vmatpush3.bf16.msra.mxu0 %v1440_v2  ;;  %s1639_s26 = scalar_lea.vmem %s1016_s17, 64  ;;  %s1774_s18 = smov [#allocation17]  }
  0x9f   : > { %1289 = vmatprep.subr.bf16.mxu0 %v1772_v0  ;;  %1284 = vmatpush3.bf16.msra.mxu1 %v1444_v8  ;;  %p1640_p11 = scmp.ne.s32.totalorder %s1016_s17, %s1639_s26  ;;  %s1643_s4 = sshll.u32 %s1774_s18, 4  ;;  %s1644_s4 = int_to_ptr.vmem [resolvable:$false] %s1643_s4 }
  0xa0   : > { %1297 = vmatprep.subr.bf16.mxu1 %v1772_v0  ;;  %s1645_s5 = scalar_lea.vmem %s1644_s4, 128  ;;  %p1646_p10 = scmp.lt.s32.totalorder %s1016_s17, %s1644_s4 }
  0xa1   : > { %1278 = vmatmul.mubr.msk.bf16.vlgmr.msra.gmra.mxu0 %vm619_vm1, %v594_v3  ;;  %p2249_p12 = scmp.ne.s32.totalorder %s2247_s29, 0  ;;  %p1647_p1 = scmp.lt.s32.totalorder %s1645_s5, %s1639_s26 }
  0xa2   : > { %1290 = vmatpush3.bf16.msra.mxu0 %v1441_v4  ;;  %1293 = vmatprep.mubr.msk.bf16.mxu0 %vm1773_vm0, %v1772_v0 }
  0xa3   : > { %1291 = vmatprep.subr.bf16.mxu0 %v1772_v0  ;;  %1286 = vmatmul.mubr.msk.bf16.vlgmr.msra.gmra.mxu1 %vm619_vm1, %v595_v9  ;;  %s1013_s15 = scalar_lea.hbm %s2248_s16, %s1254_s21  ;;  %p1641_p2 = pnand %p1640_p11, %p2249_p12 }
  0xa4   : > { %1299 = vmatprep.mubr.msk.bf16.mxu1 %vm1773_vm0, %v1772_v0  ;;  %p1648_p7 = por %p1647_p1, %p1646_p10 }
  0xa5   : > { %p1642_p5 = pneg %p1641_p2 }
  0xa6   : > { %1292 = vmatpush3.bf16.msra.mxu0 %v1442_v5 }
  0xa7   : > { %1303 = vmatprep.subr.bf16.mxu0 %v1772_v0  ;;  %p1649_p4 = pnand %p1648_p7, %p1642_p5 }
  0xa9   : > { %1294 = vmatmul.mubr.msk.bf16.vlgmr.msra.gmra.mxu0 %vm619_vm1, %v589_v6 }
  0xaa   : > { %1305 = vmatprep.mubr.msk.bf16.mxu0 %vm1773_vm0, %v1772_v0 }
 0x161   : > { %v657_v11 = vpop.f32.mrf.mxu0 }
 0x162   : > { %v658_v12 = vadd.f32 %v1233_v10, %v657_v11 }
 0x163   : > { %v1279_v13 = vpop.f32.mrf.mxu0  ;;  %v723_v28 = vpop.f32.mrf.mxu1 }
 0x164   : > { %v729_v14 = vpack.c.bf16 %v658_v12, %v658_v12  ;;  %v724_v29 = vadd.f32 %v1237_v27, %v723_v28 }
 0x165   : > { %v660_v15 = vpop.f32.mrf.mxu0  ;;  %v1287_v30 = vpop.f32.mrf.mxu1 }
 0x166   : > { %731 = vst.msk [vmem:[#allocation2] sm:$0xf] %vm730_vm2, %v729_v14  ;;  %v732_v31 = vpack.c.bf16 %v724_v29, %v724_v29 }
 0x167   : > { %v1280_v16 = vpop.f32.mrf.mxu0  ;;  %v726_v32 = vpop.f32.mrf.mxu1 }
 0x168   : > { %733 = vst.msk [vmem:[#allocation3] sm:$0xf] %vm730_vm2, %v732_v31 }
 0x169   : > { %v795_v18 = vpop.f32.mrf.mxu0  ;;  %v1288_v33 = vpop.f32.mrf.mxu1 }
 0x16a   : > { %v796_v19 = vadd.f32 %v1241_v17, %v795_v18 }
 0x16b   : > { %v1295_v20 = vpop.f32.mrf.mxu0 }
 0x16c   : > { %v801_v23 = vmul.f32 0.17677669, %v796_v19 }
 0x16d   : > { %v798_v21 = vpop.f32.mrf.mxu0  ;;  %v803_v22 = vld [vmem:[#allocation2] sm:$0xf] }
 0x16e   : > { %v809_v24 = vsel %vm619_vm1, %v803_v22, 0  ;;  %v802_v26 = vpack.c.bf16 %v801_v23, %v801_v23 }
 0x16f   : > { %1298 = vmatpush3.bf16.xpose.msra.mxu1 %v809_v24  ;;  %v1296_v25 = vpop.f32.mrf.mxu0  ;;  %v804_v34 = vld [vmem:[#allocation3] sm:$0xf] }
 0x170   : > { %1309 = vmatprep.subr.bf16.mxu1 %v1772_v0  ;;  %v871_v35 = vsel %vm869_vm3, %v804_v34, 0 }
 0x171   : > { %1304 = vmatpush3.bf16.msra.mxu0 %v871_v35 }
 0x176   : > { %1300 = vmatmul.mubr.msk.bf16.vlgmr.msra.gmra.mxu1 %vm619_vm1, %v802_v26 }
 0x177   : > { %1313 = vmatprep.mubr.msk.bf16.mxu1 %vm1773_vm0, %v1772_v0  ;;  %1310 = vmatpush3.bf16.msra.mxu1 %v1445_v46 }
 0x178   : > { %1311 = vmatprep.subr.bf16.mxu1 %v1772_v0 }
 0x17b   : > { %1312 = vmatpush3.bf16.msra.mxu1 %v1446_v51 }
 0x236   : > { %v845_v36 = vpop.f32.mrf.mxu1 }
 0x237   : > { %v852_v37 = vsel %vm851_vm4, %v845_v36, -inf }
 0x238   : > { %853 = vmax.xlane.f32.xlu0 %v852_v37  ;;  %v1301_v38 = vpop.f32.mrf.mxu1 }
 0x23a   : > { %v848_v39 = vpop.f32.mrf.mxu1 }
 0x23c   : > { %v1302_v40 = vpop.f32.mrf.mxu1 }
 0x2c1   : > { %v854_v41 = vpop.xlane.xlu0 %853 }
 0x2c2   : > { %v855_v42 = vsub.f32 %v845_v36, %v854_v41 }
 0x2c4   : > { %v856_v43 = vmul.f32 1.442695, %v855_v42 }
 0x2c6   : > { %1447 = vpow2.f32 %v856_v43 }
 0x2d3   : > { %v1448_v44 = vpop.eup %1447 }
 0x2d4   : > { %v858_v45 = vsel %vm851_vm4, %v1448_v44, 0.0 }
 0x2d5   : > { %859 = vadd.xlane.f32.xlu0 %v858_v45 }
 0x35e   : > { %v860_v47 = vpop.xlane.xlu0 %859 }
 0x35f   : > { %1449 = vrcp.f32 %v860_v47 }
 0x36c   : > { %v1450_v48 = vpop.eup %1449 }
 0x36d   : > { %v862_v49 = vmul.f32 %v1450_v48, %v1448_v44 }
 0x36f   : > { %v863_v50 = vpack.c.bf16 %v862_v49, %v862_v49 }
 0x371   : > { %1306 = vmatmul.mubr.msk.bf16.vlgmr.msra.gmra.mxu0 %vm851_vm4, %v863_v50  ;;  %865 = vst.msk [vmem:[%s587_s12] sm:$0xf] %vm864_vm5, %v863_v50 }
 0x431   : > { %v907_v52 = vpop.f32.mrf.mxu0 }
 0x432   : > { %v913_v53 = vpack.c.bf16 %v907_v52, %v907_v52 }
 0x433   : > { %v1307_v54 = vpop.f32.mrf.mxu0 }
 0x434   : > { %1314 = vmatmul.mubr.msk.bf16.vlgmr.msra.gmra.mxu1 %vm619_vm1, %v913_v53 }
 0x435   : > { %v910_v55 = vpop.f32.mrf.mxu0 }
 0x437   : > { %v1308_v56 = vpop.f32.mrf.mxu0 }
 0x438   : > { %1652 = shalt.err (!%p1649_p4)
}
 0x439   : > { %s1653_s11 = scalar_lea.hbm %s1013_s15, 64  ;;  %s1657_s14 = scalar_lea.hbm %s2248_s16, 128 }
 0x43a   : > { %p1654_p8 = scmp.ne.s32.totalorder %s1013_s15, %s1653_s11  ;;  %p1658_p0 = scmp.lt.s32.totalorder %s1013_s15, %s2248_s16 }
 0x43b   : > { %p1659_p13 = scmp.lt.s32.totalorder %s1657_s14, %s1653_s11 }
 0x43c   : > { %p1655_p6 = pnand %p1654_p8, %p2249_p12 }
 0x43d   : > { %p1660_p9 = por %p1659_p13, %p1658_p0 }
 0x43e   : > { %p1656_p3 = pneg %p1655_p6 }
 0x440   : > { %p1661_p11 = pnand %p1660_p9, %p1656_p3 }
 0x442   : > { %1664 = shalt.err (!%p1661_p11)
}
 0x443   : > { %1340 = dma.vmem_to_hbm [thread:$0]  (%p2249_p12), %s1016_s17, 64, %s1013_s15, %s987_s19  }
 0x444   : > { %s1231_s3 = sshll.u32 %s2032_s30, 3  ;;  %s2250_s21 = sld [smem:[#allocation36_spill]] }
 0x445   : > { %s1253_s25 = sshll.u32 %s1753_s24, 7  ;;  %s580_s13 = scalar_lea.vmem [#allocation16], %s1231_s3 }
 0x446   : > { %s1001_s26 = sshll.u32 %s580_s13, 4  ;;  %s2251_s5 = sld [smem:[#allocation37_spill]]  ;;  %s2132_s26 = int_to_ptr.vmem [resolvable:$true] %s1001_s26 }
 0x447   : > { %s982_s17 = scalar_lea.sflag [#allocation6], %s2032_s30  ;;  %s1665_s24 = scalar_lea.vmem %s2132_s26, 128 }
 0x448   : > { %p1666_p2 = scmp.ne.s32.totalorder %s2132_s26, %s1665_s24  ;;  %s1775_s15 = smov [#allocation16]  }
 0x449   : > { %s1669_s19 = sshll.u32 %s1775_s15, 4  ;;  %s1670_s19 = int_to_ptr.vmem [resolvable:$false] %s1669_s19 }
 0x44a   : > { %v1247_v57 = vld [vmem:[%s2250_s21] ss:$0 sm:$0xff]  ;;  %p1667_p5 = pnand %p1666_p2, %p2249_p12  ;;  %s1671_s28 = scalar_lea.vmem %s1670_s19, 256 }
 0x44b   : > { %p1672_p1 = scmp.lt.s32.totalorder %s2132_s26, %s1670_s19  ;;  %p1673_p7 = scmp.lt.s32.totalorder %s1671_s28, %s1665_s24 }
 0x44c   : > { %s2130_s11 = scalar_lea.hbm %s2251_s5, %s1253_s25  ;;  %p1668_p10 = pneg %p1667_p5 }
 0x44d   : > { %p1674_p4 = por %p1673_p7, %p1672_p1 }
 0x44f   : > { %p1675_p8 = pnand %p1674_p4, %p1668_p10 }
 0x4f4   : > { %v974_v58 = vpop.f32.mrf.mxu1 }
 0x4f5   : > { %v975_v59 = vadd.f32 %v1247_v57, %v974_v58 }
 0x4f6   : > { %v1315_v60 = vpop.f32.mrf.mxu1 }
 0x4f7   : > { %980 = vst.msk [vmem:[%s580_s13] sm:$0xff] %vm619_vm1, %v975_v59 }
 0x4f8   : > { %v977_v61 = vpop.f32.mrf.mxu1 }
 0x4f9   : > { %1678 = shalt.err (!%p1675_p8)
}
 0x4fa   : > { %s1679_s27 = scalar_lea.hbm %s2130_s11, 128  ;;  %s1683_s1 = scalar_lea.hbm %s2251_s5, 256 }
 0x4fb   : > { %p1680_p6 = scmp.ne.s32.totalorder %s2130_s11, %s1679_s27  ;;  %p1684_p13 = scmp.lt.s32.totalorder %s2130_s11, %s2251_s5 }
 0x4fc   : > { %p1685_p9 = scmp.lt.s32.totalorder %s1683_s1, %s1679_s27 }
 0x4fd   : > { %p1681_p3 = pnand %p1680_p6, %p2249_p12 }
 0x4fe   : > { %p1686_p11 = por %p1685_p9, %p1684_p13 }
 0x4ff   : > { %p1682_p0 = pneg %p1681_p3 }
 0x501   : > { %p1687_p2 = pnand %p1686_p11, %p1682_p0 }
 0x503   : > { %1690 = shalt.err (!%p1687_p2)
}
 0x504   : > { %1339 = dma.vmem_to_hbm [thread:$0]  (%p2249_p12), %s2132_s26, 128, %s2130_s11, %s982_s17   ;;  %v1316_v62 = vpop.f32.mrf.mxu1 }
 0x505 PF: > { %s2252_s10 = sld [smem:[#allocation25_spill]] }
 0x506   : > { %s2253_s12 = sld [smem:[#allocation31_spill]] }
 0x507   : > { %s2254_s21 = sld [smem:[#allocation27_spill]] }
 0x50b   : > { %s1027_s25 = sand.u32 1, %s2252_s10  }
 0x50c   : > { %p2255_p5 = scmp.ne.s32.totalorder %s2253_s12, 0  ;;  %s1028_s13 = scalar_lea.sflag [#allocation6], %s1027_s25 }
 0x50d   : > { %p2256_p10 = scmp.ge.s32.totalorder %s2254_s21, 2 }
 0x50f   : > { %p1367_p1 = pnand %p2256_p10, %p2255_p5 }
 0x511   : > { %p1368_p7 = pneg %p1367_p1 }
 0x513   : > { %1732 = dma.done.wait (%p1368_p7), %s1028_s13, 128  }
 0x514   : > { %1734 = vsyncadd (%p1368_p7), %s1028_s13, 4294967168  ;;  %s1037_s18 = scalar_lea.sflag [#allocation18], %s1027_s25 }
 0x515   : > { %1736 = dma.done.wait (%p1368_p7), %s1037_s18, 64  }
 0x516   : > { %1738 = vsyncadd (%p1368_p7), %s1037_s18, 4294967232  ;;  %s37_s26 = sadd.s32 1, %s2254_s21   ;;  %s2257_s29 = sld [smem:[#allocation30_spill]] }
 0x517   : > { %p34_p4 = scmp.ge.s32.totalorder %s37_s26, 4   ;;  %s2258_s24 = sld [smem:[#allocation26_spill]] }
 0x518   : > { %s2259_s25 = sld [smem:[#allocation28_spill]]  ;;  %s2260_s21 = smov %s1745_s22 }
 0x519   : > { %s2261_s22 = smov %s1749_s23  ;;  %36 = sbr.rel (!%p34_p4) target bundleno = 20 (0x14), region = 170 }
 0x51c   : > { %s2262_s23 = smov %s2257_s29 }
 0x51e   :  { %1042 = vsyncpa [#allocation5], 1 }
 0x51f   :  { %1044 = vsyncpa [#allocation5 + $0x1], 1 }
 0x520   :  { %1045 = vsyncpa [#allocation8], 1 }
 0x521   :  { %1047 = vsyncpa [#allocation8 + $0x1], 1 }
 0x522   :  { %1048 = vsyncpa [#allocation11], 1 }
 0x523   :  { %1049 = vsyncpa [#allocation14], 1 }
 0x524   :  { %1050 = vsyncpa [#allocation6], 1 }
 0x525   :  { %1052 = vsyncpa [#allocation6 + $0x1], 1 }
 0x526   :  { %1053 = vsyncpa [#allocation18], 1 }
 0x527   :  { %1055 = vsyncpa [#allocation18 + $0x1], 1 }

// kernel: tpu_custom_call.1
= control target key start
LH: loop header
LB: loop body
LE: loop exit
PB: predicated region body
PF: predicated region fallthrough
CT: control target
= control target key end

     0   :  { %s2179_s0 = inlined_call_operand.hbm [shape: bf16[2,8,32], index: 0, kind: input, shape index: {}]   ;;  %s2180_s1 = inlined_call_operand.hbm [shape: bf16[2,8,32], index: 1, kind: input, shape index: {}]   ;;  %s2181_s2 = inlined_call_operand.hbm [shape: bf16[2,8,32], index: 2, kind: input, shape index: {}]   ;;  %s2182_s3 = inlined_call_operand.hbm [shape: bf16[32,32], index: 3, kind: input, shape index: {}]   ;;  %s2183_s4 = inlined_call_operand.hbm [shape: bf16[32,32], index: 4, kind: input, shape index: {}]   ;;  %s2184_s5 = inlined_call_operand.hbm [shape: bf16[32,32], index: 5, kind: input, shape index: {}]   ;;  %s2185_s6 = inlined_call_operand.hbm [shape: bf16[32,32], index: 6, kind: input, shape index: {}]   ;;  %s2186_s7 = inlined_call_operand.vmem [shape: f32[1,32], index: 7, kind: input, shape index: {}]   ;;  %s2187_s8 = inlined_call_operand.vmem [shape: f32[1,32], index: 8, kind: input, shape index: {}]   ;;  %s2188_s9 = inlined_call_operand.vmem [shape: f32[1,32], index: 9, kind: input, shape index: {}]   ;;  %s2189_s10 = inlined_call_operand.vmem [shape: f32[1,32], index: 10, kind: input, shape index: {}]   ;;  %s2190_s11 = inlined_call_operand.hbm [shape: f32[2,8,32], index: 11, kind: output, shape index: {0}]   ;;  %s2191_s12 = inlined_call_operand.hbm [shape: bf16[2,1,8,8], index: 12, kind: output, shape index: {1}]  }
   0x1   :  { %2211 = sst [smem:[#allocation32_spill]] %s2180_s1 }
   0x2   :  { %2212 = sst [smem:[#allocation33_spill]] %s2182_s3 }
   0x3   :  { %2213 = sst [smem:[#allocation34_spill]] %s2183_s4 }
   0x4   :  { %2214 = sst [smem:[#allocation35_spill]] %s2184_s5 }
   0x5   :  { %2215 = sst [smem:[#allocation36_spill]] %s2189_s10 }
   0x6   :  { %2216 = sst [smem:[#allocation37_spill]] %s2190_s11 }
   0x7   :  { %2217 = sst [smem:[#allocation38_spill]] %s2191_s12 }
   0x8   :  { %18 = vsyncpa [#allocation5], 0 }
   0x9   :  { %20 = vsyncpa [#allocation5 + $0x1], 0 }
   0xa   :  { %21 = vsyncpa [#allocation8], 0 }
   0xb   :  { %23 = vsyncpa [#allocation8 + $0x1], 0 }
   0xc   :  { %24 = vsyncpa [#allocation11], 0 }
   0xd   :  { %25 = vsyncpa [#allocation14], 0 }
   0xe   :  { %26 = vsyncpa [#allocation6], 0 }
   0xf   :  { %28 = vsyncpa [#allocation6 + $0x1], 0 }
  0x10   :  { %29 = vsyncpa [#allocation18], 0 }
  0x11   :  { %31 = vsyncpa [#allocation18 + $0x1], 0  ;;  %s1841_s21 = smov 0   ;;  %s1843_s22 = smov 0  }
  0x12   :  { %s1845_s23 = smov 0   ;;  %s1847_s24 = smov 0  }
  0x13   :  { %s1849_s25 = smov 0   ;;  %s1851_s26 = smov 0  }
  0x14 LB: > { %2218 = sst [smem:[#allocation25_spill]] %s1741_s21  ;;  %s1872_s27 = sadd.s32 4294967295, %s1761_s26   ;;  %s1761_s26 = sphi %s1851_s26, %s37_s26   ;;  %s1757_s25 = sphi %s1849_s25, %s2259_s25   ;;  %s1753_s24 = sphi %s1847_s24, %s2258_s24   ;;  %s1749_s23 = sphi %s1845_s23, %s2262_s23   ;;  %s1745_s22 = sphi %s1843_s22, %s2261_s22   ;;  %s1741_s21 = sphi %s1841_s21, %s2260_s21  }
  0x15   : > { %2219 = sst [smem:[#allocation26_spill]] %s1757_s25  ;;  %p1211_p0 = scmp.ge.s32.totalorder %s1761_s26, 1 }
  0x16   : > { %2220 = sst [smem:[#allocation27_spill]] %s1761_s26  ;;  %p2204_p1 = scmp.eq.s32.totalorder %s1872_s27, 0 }
  0x17   : > { %p358_p2 = scmp.lt.s32.totalorder %s1761_s26, 3  ;;  %s1763_s29 = smov [#allocation10]  }
  0x18   : > { %s370_s30 = sshll.u32 %s1763_s29, 4  ;;  %s1764_s14 = smov [#allocation13]   ;;  %s371_s30 = int_to_ptr.vmem [resolvable:$true] %s370_s30 }
  0x19   : > { %p1877_p3 = pnand %p1211_p0, %p358_p2  ;;  %s396_s15 = sshll.u32 %s1764_s14, 4  ;;  %s397_s15 = int_to_ptr.vmem [resolvable:$true] %s396_s15 }
  0x1a   : > { %s1462_s16 = scalar_lea.vmem %s371_s30, 256  ;;  %p1470_p11 = scmp.lt.s32.totalorder %s371_s30, %s371_s30 }
  0x1b   : > { %p1343_p4 = pneg %p1877_p3  ;;  %p1463_p8 = scmp.ne.s32.totalorder %s371_s30, %s1462_s16 }
  0x1c   : > { %p1471_p12 = scmp.lt.s32.totalorder %s1462_s16, %s1462_s16 }
  0x1d   : > { %p1886_p6 = pnand %p1343_p4, %p2204_p1 }
  0x1e   : > { %p1472_p13 = por %p1471_p12, %p1470_p11 }
  0x1f   : > { %p2205_p7 = pneg %p1886_p6 }
  0x21   : > { %p1465_p9 = pnand %p1463_p8, %p2205_p7 }
  0x23   : > { %p1466_p10 = pneg %p1465_p9 }
  0x25   : > { %p1473_p0 = pnand %p1472_p13, %p1466_p10 }
  0x27   : > { %1476 = shalt.err (!%p1473_p0)
}
  0x28   : > { %s2192_s17 = smov 64   ;;  %s2194_s18 = smov 4  }
  0x29   : > { %s2223_s3 = sld [smem:[#allocation33_spill]]  ;;  %s1488_s29 = scalar_lea.vmem %s397_s15, 256 }
  0x2a   : > { %p1489_p2 = scmp.ne.s32.totalorder %s397_s15, %s1488_s29  ;;  %p1496_p9 = scmp.lt.s32.totalorder %s397_s15, %s397_s15 }
  0x2b   : > { %p1497_p10 = scmp.lt.s32.totalorder %s1488_s29, %s1488_s29 }
  0x2c   : > { %p1491_p4 = pnand %p1489_p2, %p2205_p7 }
  0x2d   : > { %p1498_p11 = por %p1497_p10, %p1496_p9 }
  0x2e   : > { %p1492_p8 = pneg %p1491_p4 }
  0x2f   : > { %1346 = dma.hbm_to_vmem [thread:$0]  (!%p1886_p6), %s2223_s3, 256, %s371_s30, [#allocation11], %s2192_s17, %s2192_s17, %s2194_s18  }
  0x30   : > { %p1499_p12 = pnand %p1498_p11, %p1492_p8 }
  0x32   : > { %1502 = shalt.err (!%p1499_p12)
}
  0x33   : > { %s2224_s5 = sld [smem:[#allocation35_spill]]  ;;  %s1210_s30 = sadd.s32 4294967294, %s1761_s26  }
  0x34   : > { %s49_s19 = sadd.s32 1, %s1757_s25  ;;  %s58_s20 = sadd.s32 1, %s1749_s23 }
  0x35   : > { %p51_p13 = scmp.ge.s32.totalorder %s49_s19, 2  ;;  %p65_p0 = scmp.ne.s32.totalorder %s1749_s23, %s1745_s22 }
  0x36   : > { %p66_p2 = scmp.eq.s32.totalorder %s1761_s26, 0  ;;  %p71_p8 = scmp.ne.s32.totalorder %s1745_s22, %s1741_s21 }
  0x37   : > { %s2264_s19 = smov (%p51_p13, %s49_s19), 0  ;;  %p317_p9 = scmp.eq.s32.totalorder %s1872_s27, 1 }
  0x38   : > { %2225 = sst [smem:[#allocation28_spill]] %s2264_s19  ;;  %p1922_p4 = por %p66_p2, %p65_p0 }
  0x39   : > { %1352 = dma.hbm_to_vmem [thread:$0]  (!%p1886_p6), %s2224_s5, 256, %s397_s15, [#allocation14], %s2192_s17, %s2192_s17, %s2194_s18  }
  0x3a   : > { %s53_s15 = ssub.s32 %s1757_s25, %s2264_s19  ;;  %p1933_p11 = por %p2204_p1, %p71_p8 }
  0x3b   : > { %p56_p10 = scmp.eq.s32.totalorder %s53_s15, 0  ;;  %p1937_p12 = por %p317_p9, %p65_p0 }
  0x3c   : > { %p323_p13 = scmp.eq.s32.totalorder %s1210_s30, 1  ;;  %p1377_p5 = scmp.lt.s32.totalorder %s1761_s26, 2 }
  0x3d   : > { %s2228_s16 = scalar_select %p1937_p12, 1, 0 }
  0x3e   : > { %s1942_s17 = scalar_select %p56_p10, %s1749_s23, %s58_s20  }
  0x3f   : > { %2229 = sst [smem:[#allocation29_spill]] %s2228_s16  ;;  %p1944_p2 = por %p323_p13, %p71_p8 }
  0x40   : > { %2230 = sst [smem:[#allocation30_spill]] %s1942_s17  ;;  %s2201_s3 = sand.u32 1, %s1749_s23  }
  0x41   : > { %s2231_s18 = scalar_select %p1944_p2, 1, 0 }
  0x42   : > { %s1951_s5 = sshll.u32 %s1757_s25, 6  ;;  %s1955_s15 = sshll.u32 %s2201_s3, 2 }
  0x43   : > { %2232 = sst [smem:[#allocation31_spill]] %s2231_s18  ;;  %p1959_p0 = pnand %p1377_p5, %p1922_p4 }
  0x44   : > { %s454_s30 = sand.u32 1, %s1761_s26   ;;  %s2234_s1 = sld [smem:[#allocation32_spill]] }
  0x45   : > { %s458_s21 = scalar_lea.vmem [#allocation7], %s1955_s15  ;;  %s1969_s11 = scalar_lea.sflag [#allocation8], %s454_s30 }
  0x46   : > { %s465_s25 = sshll.u32 %s458_s21, 4  ;;  %p2206_p8 = pneg %p1959_p0  ;;  %s466_s25 = int_to_ptr.vmem [resolvable:$true] %s465_s25 }
  0x47   : > { %s1516_s29 = scalar_lea.vmem %s466_s25, 64  ;;  %s1767_s3 = smov [#allocation7]  }
  0x48   : > { %p1517_p9 = scmp.ne.s32.totalorder %s466_s25, %s1516_s29  ;;  %s1521_s10 = sshll.u32 %s1767_s3, 4  ;;  %s1522_s10 = int_to_ptr.vmem [resolvable:$false] %s1521_s10 }
  0x49   : > { %s1523_s26 = scalar_lea.vmem %s1522_s10, 128  ;;  %p1524_p10 = scmp.lt.s32.totalorder %s466_s25, %s1522_s10 }
  0x4a   : > { %s463_s18 = scalar_lea.hbm %s2234_s1, %s1951_s5  ;;  %p1519_p5 = pnand %p1517_p9, %p2206_p8 }
  0x4b   : > { %p1525_p13 = scmp.lt.s32.totalorder %s1523_s26, %s1516_s29 }
  0x4c   : > { %p1520_p4 = pneg %p1519_p5 }
  0x4d   : > { %p1526_p1 = por %p1525_p13, %p1524_p10 }
  0x4f   : > { %p1527_p7 = pnand %p1526_p1, %p1520_p4 }
  0x51   : > { %1530 = shalt.err (!%p1527_p7)
}
  0x52   : > { %1362 = dma.hbm_to_vmem [thread:$0]  (!%p1959_p0), %s463_s18, 64, %s466_s25, %s1969_s11  }
  0x53   : > { %s1768_s21 = smov [#allocation12]   ;;  %s1769_s30 = smov [#allocation15]  }
  0x54   : > { %s383_s17 = sshll.u32 %s1768_s21, 4  ;;  %s409_s20 = sshll.u32 %s1769_s30, 4  ;;  %s384_s17 = int_to_ptr.vmem [resolvable:$true] %s383_s17  ;;  %s410_s20 = int_to_ptr.vmem [resolvable:$true] %s409_s20 }
  0x55   : > { %s1542_s1 = scalar_lea.vmem %s384_s17, 256  ;;  %p2235_p5 = pneg %p1886_p6 }
  0x56   : > { %p1543_p9 = scmp.ne.s32.totalorder %s384_s17, %s1542_s1  ;;  %p1550_p12 = scmp.lt.s32.totalorder %s384_s17, %s384_s17 }
  0x57   : > { %p1551_p10 = scmp.lt.s32.totalorder %s1542_s1, %s1542_s1 }
  0x58   : > { %p1545_p8 = pnand %p1543_p9, %p2235_p5 }
  0x59   : > { %p1552_p1 = por %p1551_p10, %p1550_p12 }
  0x5a   : > { %p1546_p2 = pneg %p1545_p8 }
  0x5c   : > { %p1553_p7 = pnand %p1552_p1, %p1546_p2 }
  0x5e   : > { %1556 = shalt.err (!%p1553_p7)
}
  0x5f   : > { %s2236_s3 = smov 4   ;;  %s2237_s10 = smov 64  }
  0x60   : > { %s2238_s4 = sld [smem:[#allocation34_spill]]  ;;  %s1568_s18 = scalar_lea.vmem %s410_s20, 256 }
  0x61   : > { %p1569_p4 = scmp.ne.s32.totalorder %s410_s20, %s1568_s18  ;;  %p2239_p8 = pmov %p2235_p5 }
  0x62   : > { %p1576_p12 = scmp.lt.s32.totalorder %s410_s20, %s410_s20  ;;  %p1577_p2 = scmp.lt.s32.totalorder %s1568_s18, %s1568_s18 }
  0x63   : > { %p1571_p13 = pnand %p1569_p4, %p2239_p8 }
  0x64   : > { %p1578_p5 = por %p1577_p2, %p1576_p12 }
  0x65   : > { %p1572_p9 = pneg %p1571_p13 }
  0x66   : > { %1349 = dma.hbm_to_vmem [thread:$0]  (!%p1886_p6), %s2238_s4, 256, %s384_s17, [#allocation11], %s2237_s10, %s2237_s10, %s2236_s3  }
  0x67   : > { %p1579_p10 = pnand %p1578_p5, %p1572_p9 }
  0x69   : > { %1582 = shalt.err (!%p1579_p10)
}
  0x6a   : > { %1355 = dma.hbm_to_vmem [thread:$0]  (!%p1886_p6), %s2185_s6, 256, %s410_s20, [#allocation14], %s2237_s10, %s2237_s10, %s2236_s3  }
  0x6b   : > { %s445_s30 = scalar_lea.hbm %s2179_s0, %s1951_s5  ;;  %s439_s25 = scalar_lea.vmem [#allocation4], %s1955_s15 }
  0x6c   : > { %s447_s26 = sshll.u32 %s439_s25, 4  ;;  %s481_s4 = scalar_lea.hbm %s2181_s2, %s1951_s5  ;;  %s448_s26 = int_to_ptr.vmem [resolvable:$true] %s447_s26 }
  0x6d   : > { %s2240_s12 = sand.u32 1, %s1749_s23   ;;  %s1596_s1 = scalar_lea.vmem %s448_s26, 64 }
  0x6e   : > { %s436_s16 = scalar_lea.sflag [#allocation5], %s2240_s12  ;;  %p1597_p1 = scmp.ne.s32.totalorder %s448_s26, %s1596_s1 }
  0x6f   : > { %p2241_p7 = pneg %p1959_p0  ;;  %s1770_s20 = smov [#allocation4]  }
  0x70   : > { %s1601_s3 = sshll.u32 %s1770_s20, 4  ;;  %s1602_s3 = int_to_ptr.vmem [resolvable:$false] %s1601_s3 }
  0x71   : > { %p1599_p4 = pnand %p1597_p1, %p2241_p7  ;;  %s1603_s10 = scalar_lea.vmem %s1602_s3, 128 }
  0x72   : > { %p1604_p6 = scmp.lt.s32.totalorder %s448_s26, %s1602_s3  ;;  %p1605_p13 = scmp.lt.s32.totalorder %s1603_s10, %s1596_s1 }
  0x73   : > { %p1600_p8 = pneg %p1599_p4 }
  0x74   : > { %p1606_p9 = por %p1605_p13, %p1604_p6 }
  0x76   : > { %p1607_p12 = pnand %p1606_p9, %p1600_p8 }
  0x78   : > { %1610 = shalt.err (!%p1607_p12)
}
  0x79   : > { %1359 = dma.hbm_to_vmem [thread:$0]  (!%p1959_p0), %s445_s30, 64, %s448_s26, %s436_s16  }
  0x7a   : > { %s476_s12 = scalar_lea.vmem [#allocation9], %s1955_s15  ;;  %p2242_p5 = pmov %p2241_p7 }
  0x7b   : > { %s483_s29 = sshll.u32 %s476_s12, 4  ;;  %s1771_s17 = smov [#allocation9]   ;;  %s484_s29 = int_to_ptr.vmem [resolvable:$true] %s483_s29 }
  0x7c   : > { %s1624_s21 = scalar_lea.vmem %s484_s29, 64  ;;  %s1629_s25 = sshll.u32 %s1771_s17, 4  ;;  %s1630_s25 = int_to_ptr.vmem [resolvable:$false] %s1629_s25 }
  0x7d   : > { %p1625_p2 = scmp.ne.s32.totalorder %s484_s29, %s1624_s21  ;;  %s1631_s13 = scalar_lea.vmem %s1630_s25, 128 }
  0x7e   : > { %p1632_p7 = scmp.lt.s32.totalorder %s484_s29, %s1630_s25  ;;  %p1633_p4 = scmp.lt.s32.totalorder %s1631_s13, %s1624_s21 }
  0x7f   : > { %p1627_p10 = pnand %p1625_p2, %p2242_p5 }
  0x80   : > { %p1634_p8 = por %p1633_p4, %p1632_p7 }
  0x81   : > { %p1628_p1 = pneg %p1627_p10 }
  0x83   : > { %p1635_p6 = pnand %p1634_p8, %p1628_p1 }
  0x85   : > { %1638 = shalt.err (!%p1635_p6)
}
  0x86   : > { %1365 = dma.hbm_to_vmem [thread:$0]  (!%p1959_p0), %s481_s4, 64, %s484_s29, %s1969_s11  }
  0x87   : > { %492 = sbr.rel (%p1877_p3) target bundleno = 1285 (0x505), region = 64  ;;  %s2032_s30 = sand.u32 (!%p1877_p3), 1, %s1745_s22  }
  0x88   : > { %s2035_s26 = sshll.u32 (!%p1877_p3), %s2032_s30, 2  ;;  %s495_s19 = scalar_lea.sflag (!%p1877_p3), [#allocation5], %s2032_s30 }
  0x89   : > { %s498_s18 = scalar_lea.vmem (!%p1877_p3), [#allocation4], %s2035_s26 }
  0x8c   : > { %1716 = dma.done.wait (%p1933_p11), %s495_s19, 64  }
  0x8d   : > { %1718 = vsyncadd (%p1933_p11), %s495_s19, 4294967232  ;;  %s503_s4 = sand.u32 1, %s1872_s27   ;;  %s507_s11 = scalar_lea.vmem [#allocation7], %s2035_s26 }
  0x8e   : > { %s504_s5 = scalar_lea.sflag [#allocation8], %s503_s4 }
  0x8f   : > { %1720 = dma.done.wait (%p1933_p11), %s504_s5, 128  }
  0x90   : > { %1722 = vsyncadd (%p1933_p11), %s504_s5, 4294967168  ;;  %s516_s28 = scalar_lea.vmem [#allocation9], %s2035_s26  ;;  %p2243_p3 = scmp.eq.s32.totalorder %s1872_s27, 0 }
  0x92   : > { %1724 = dma.done.wait (%p2243_p3), [#allocation11], 512   ;;  %p2244_p0 = pmov %p2243_p3 }
  0x94   : > { %1726 = vsyncadd (%p2244_p0), [#allocation11], 4294966784  ;;  %p2245_p13 = pmov %p2244_p0 }
  0x95   : > { %p2246_p9 = pmov %p2244_p0 }
  0x96   : > { %1728 = dma.done.wait (%p2245_p13), [#allocation14], 512  }
  0x97   : > { %1730 = vsyncadd (%p2246_p9), [#allocation14], 4294966784  ;;  %v1772_v0 = vmov 0.0   ;;  %vm1773_vm0 = vmmov 0   ;;  %v1439_v1 = vld [vmem:[#allocation12 + $0x8] sm:$0xff]   ;;  %v1440_v2 = vld [vmem:[#allocation12] sm:$0xff]  }
  0x98   : > { %1273 = vmatprep.subr.bf16.mxu0 %v1772_v0  ;;  %1277 = vmatprep.mubr.msk.bf16.mxu0 %vm1773_vm0, %v1772_v0  ;;  %v594_v3 = vld [vmem:[%s507_s11] sm:$0xf]  ;;  %vm619_vm1 = vcmask 261120   ;;  %v1441_v4 = vld [vmem:[#allocation10 + $0x8] sm:$0xff]   ;;  %v1442_v5 = vld [vmem:[#allocation10] sm:$0xff]   ;;  %vm730_vm2 = vcmask 257024  }
  0x99   : > { %1281 = vmatprep.subr.bf16.mxu1 %v1772_v0  ;;  %1285 = vmatprep.mubr.msk.bf16.mxu1 %vm1773_vm0, %v1772_v0  ;;  %v589_v6 = vld [vmem:[%s498_s18] sm:$0xf]  ;;  %v1444_v8 = vld [vmem:[#allocation13] sm:$0xff]   ;;  %v595_v9 = vld [vmem:[%s516_s28] sm:$0xf]  ;;  %vm869_vm3 = vcmask 1043456  }
  0x9a   : > { %1274 = vmatpush3.bf16.msra.mxu0 %v1439_v1  ;;  %v1443_v7 = vld [vmem:[#allocation13 + $0x8] sm:$0xff]   ;;  %v1233_v10 = vld [vmem:[%s2187_s8] ss:$0 sm:$0xff]  ;;  %vm851_vm4 = vcmask 64512   ;;  %v1445_v46 = vld [vmem:[#allocation15 + $0x8] sm:$0xff]   ;;  %vm864_vm5 = vcmask 60416  }
  0x9b   : > { %1275 = vmatprep.subr.bf16.mxu0 %v1772_v0  ;;  %1282 = vmatpush3.bf16.msra.mxu1 %v1443_v7  ;;  %v1241_v17 = vld [vmem:[%s2186_s7] ss:$0 sm:$0xff]  ;;  %s587_s12 = scalar_lea.vmem [#allocation17], %s2035_s26  ;;  %s2247_s29 = sld [smem:[#allocation29_spill]]  ;;  %v1446_v51 = vld [vmem:[#allocation15] sm:$0xff]  }
  0x9c   : > { %1283 = vmatprep.subr.bf16.mxu1 %v1772_v0  ;;  %v1237_v27 = vld [vmem:[%s2188_s9] ss:$0 sm:$0xff]  ;;  %s1254_s21 = sshll.u32 %s1753_s24, 6  ;;  %s1015_s17 = sshll.u32 %s587_s12, 4  ;;  %s1016_s17 = int_to_ptr.vmem [resolvable:$true] %s1015_s17 }
  0x9d   : > { %s2248_s16 = sld [smem:[#allocation38_spill]]  ;;  %s987_s19 = scalar_lea.sflag [#allocation18], %s2032_s30 }
  0x9e   : > { %1276 = vmatpush3.bf16.msra.mxu0 %v1440_v2  ;;  %s1639_s26 = scalar_lea.vmem %s1016_s17, 64  ;;  %s1774_s18 = smov [#allocation17]  }
  0x9f   : > { %1289 = vmatprep.subr.bf16.mxu0 %v1772_v0  ;;  %1284 = vmatpush3.bf16.msra.mxu1 %v1444_v8  ;;  %p1640_p11 = scmp.ne.s32.totalorder %s1016_s17, %s1639_s26  ;;  %s1643_s4 = sshll.u32 %s1774_s18, 4  ;;  %s1644_s4 = int_to_ptr.vmem [resolvable:$false] %s1643_s4 }
  0xa0   : > { %1297 = vmatprep.subr.bf16.mxu1 %v1772_v0  ;;  %s1645_s5 = scalar_lea.vmem %s1644_s4, 128  ;;  %p1646_p10 = scmp.lt.s32.totalorder %s1016_s17, %s1644_s4 }
  0xa1   : > { %1278 = vmatmul.mubr.msk.bf16.vlgmr.msra.gmra.mxu0 %vm619_vm1, %v594_v3  ;;  %p2249_p12 = scmp.ne.s32.totalorder %s2247_s29, 0  ;;  %p1647_p1 = scmp.lt.s32.totalorder %s1645_s5, %s1639_s26 }
  0xa2   : > { %1290 = vmatpush3.bf16.msra.mxu0 %v1441_v4  ;;  %1293 = vmatprep.mubr.msk.bf16.mxu0 %vm1773_vm0, %v1772_v0 }
  0xa3   : > { %1291 = vmatprep.subr.bf16.mxu0 %v1772_v0  ;;  %1286 = vmatmul.mubr.msk.bf16.vlgmr.msra.gmra.mxu1 %vm619_vm1, %v595_v9  ;;  %s1013_s15 = scalar_lea.hbm %s2248_s16, %s1254_s21  ;;  %p1641_p2 = pnand %p1640_p11, %p2249_p12 }
  0xa4   : > { %1299 = vmatprep.mubr.msk.bf16.mxu1 %vm1773_vm0, %v1772_v0  ;;  %p1648_p7 = por %p1647_p1, %p1646_p10 }
  0xa5   : > { %p1642_p5 = pneg %p1641_p2 }
  0xa6   : > { %1292 = vmatpush3.bf16.msra.mxu0 %v1442_v5 }
  0xa7   : > { %1303 = vmatprep.subr.bf16.mxu0 %v1772_v0  ;;  %p1649_p4 = pnand %p1648_p7, %p1642_p5 }
  0xa9   : > { %1294 = vmatmul.mubr.msk.bf16.vlgmr.msra.gmra.mxu0 %vm619_vm1, %v589_v6 }
  0xaa   : > { %1305 = vmatprep.mubr.msk.bf16.mxu0 %vm1773_vm0, %v1772_v0 }
 0x161   : > { %v657_v11 = vpop.f32.mrf.mxu0 }
 0x162   : > { %v658_v12 = vadd.f32 %v1233_v10, %v657_v11 }
 0x163   : > { %v1279_v13 = vpop.f32.mrf.mxu0  ;;  %v723_v28 = vpop.f32.mrf.mxu1 }
 0x164   : > { %v729_v14 = vpack.c.bf16 %v658_v12, %v658_v12  ;;  %v724_v29 = vadd.f32 %v1237_v27, %v723_v28 }
 0x165   : > { %v660_v15 = vpop.f32.mrf.mxu0  ;;  %v1287_v30 = vpop.f32.mrf.mxu1 }
 0x166   : > { %731 = vst.msk [vmem:[#allocation2] sm:$0xf] %vm730_vm2, %v729_v14  ;;  %v732_v31 = vpack.c.bf16 %v724_v29, %v724_v29 }
 0x167   : > { %v1280_v16 = vpop.f32.mrf.mxu0  ;;  %v726_v32 = vpop.f32.mrf.mxu1 }
 0x168   : > { %733 = vst.msk [vmem:[#allocation3] sm:$0xf] %vm730_vm2, %v732_v31 }
 0x169   : > { %v795_v18 = vpop.f32.mrf.mxu0  ;;  %v1288_v33 = vpop.f32.mrf.mxu1 }
 0x16a   : > { %v796_v19 = vadd.f32 %v1241_v17, %v795_v18 }
 0x16b   : > { %v1295_v20 = vpop.f32.mrf.mxu0 }
 0x16c   : > { %v801_v23 = vmul.f32 0.17677669, %v796_v19 }
 0x16d   : > { %v798_v21 = vpop.f32.mrf.mxu0  ;;  %v803_v22 = vld [vmem:[#allocation2] sm:$0xf] }
 0x16e   : > { %v809_v24 = vsel %vm619_vm1, %v803_v22, 0  ;;  %v802_v26 = vpack.c.bf16 %v801_v23, %v801_v23 }
 0x16f   : > { %1298 = vmatpush3.bf16.xpose.msra.mxu1 %v809_v24  ;;  %v1296_v25 = vpop.f32.mrf.mxu0  ;;  %v804_v34 = vld [vmem:[#allocation3] sm:$0xf] }
 0x170   : > { %1309 = vmatprep.subr.bf16.mxu1 %v1772_v0  ;;  %v871_v35 = vsel %vm869_vm3, %v804_v34, 0 }
 0x171   : > { %1304 = vmatpush3.bf16.msra.mxu0 %v871_v35 }
 0x176   : > { %1300 = vmatmul.mubr.msk.bf16.vlgmr.msra.gmra.mxu1 %vm619_vm1, %v802_v26 }
 0x177   : > { %1313 = vmatprep.mubr.msk.bf16.mxu1 %vm1773_vm0, %v1772_v0  ;;  %1310 = vmatpush3.bf16.msra.mxu1 %v1445_v46 }
 0x178   : > { %1311 = vmatprep.subr.bf16.mxu1 %v1772_v0 }
 0x17b   : > { %1312 = vmatpush3.bf16.msra.mxu1 %v1446_v51 }
 0x236   : > { %v845_v36 = vpop.f32.mrf.mxu1 }
 0x237   : > { %v852_v37 = vsel %vm851_vm4, %v845_v36, -inf }
 0x238   : > { %853 = vmax.xlane.f32.xlu0 %v852_v37  ;;  %v1301_v38 = vpop.f32.mrf.mxu1 }
 0x23a   : > { %v848_v39 = vpop.f32.mrf.mxu1 }
 0x23c   : > { %v1302_v40 = vpop.f32.mrf.mxu1 }
 0x2c1   : > { %v854_v41 = vpop.xlane.xlu0 %853 }
 0x2c2   : > { %v855_v42 = vsub.f32 %v845_v36, %v854_v41 }
 0x2c4   : > { %v856_v43 = vmul.f32 1.442695, %v855_v42 }
 0x2c6   : > { %1447 = vpow2.f32 %v856_v43 }
 0x2d3   : > { %v1448_v44 = vpop.eup %1447 }
 0x2d4   : > { %v858_v45 = vsel %vm851_vm4, %v1448_v44, 0.0 }
 0x2d5   : > { %859 = vadd.xlane.f32.xlu0 %v858_v45 }
 0x35e   : > { %v860_v47 = vpop.xlane.xlu0 %859 }
 0x35f   : > { %1449 = vrcp.f32 %v860_v47 }
 0x36c   : > { %v1450_v48 = vpop.eup %1449 }
 0x36d   : > { %v862_v49 = vmul.f32 %v1450_v48, %v1448_v44 }
 0x36f   : > { %v863_v50 = vpack.c.bf16 %v862_v49, %v862_v49 }
 0x371   : > { %1306 = vmatmul.mubr.msk.bf16.vlgmr.msra.gmra.mxu0 %vm851_vm4, %v863_v50  ;;  %865 = vst.msk [vmem:[%s587_s12] sm:$0xf] %vm864_vm5, %v863_v50 }
 0x431   : > { %v907_v52 = vpop.f32.mrf.mxu0 }
 0x432   : > { %v913_v53 = vpack.c.bf16 %v907_v52, %v907_v52 }
 0x433   : > { %v1307_v54 = vpop.f32.mrf.mxu0 }
 0x434   : > { %1314 = vmatmul.mubr.msk.bf16.vlgmr.msra.gmra.mxu1 %vm619_vm1, %v913_v53 }
 0x435   : > { %v910_v55 = vpop.f32.mrf.mxu0 }
 0x437   : > { %v1308_v56 = vpop.f32.mrf.mxu0 }
 0x438   : > { %1652 = shalt.err (!%p1649_p4)
}
 0x439   : > { %s1653_s11 = scalar_lea.hbm %s1013_s15, 64  ;;  %s1657_s14 = scalar_lea.hbm %s2248_s16, 128 }
 0x43a   : > { %p1654_p8 = scmp.ne.s32.totalorder %s1013_s15, %s1653_s11  ;;  %p1658_p0 = scmp.lt.s32.totalorder %s1013_s15, %s2248_s16 }
 0x43b   : > { %p1659_p13 = scmp.lt.s32.totalorder %s1657_s14, %s1653_s11 }
 0x43c   : > { %p1655_p6 = pnand %p1654_p8, %p2249_p12 }
 0x43d   : > { %p1660_p9 = por %p1659_p13, %p1658_p0 }
 0x43e   : > { %p1656_p3 = pneg %p1655_p6 }
 0x440   : > { %p1661_p11 = pnand %p1660_p9, %p1656_p3 }
 0x442   : > { %1664 = shalt.err (!%p1661_p11)
}
 0x443   : > { %1340 = dma.vmem_to_hbm [thread:$0]  (%p2249_p12), %s1016_s17, 64, %s1013_s15, %s987_s19  }
 0x444   : > { %s1231_s3 = sshll.u32 %s2032_s30, 3  ;;  %s2250_s21 = sld [smem:[#allocation36_spill]] }
 0x445   : > { %s1253_s25 = sshll.u32 %s1753_s24, 7  ;;  %s580_s13 = scalar_lea.vmem [#allocation16], %s1231_s3 }
 0x446   : > { %s1001_s26 = sshll.u32 %s580_s13, 4  ;;  %s2251_s5 = sld [smem:[#allocation37_spill]]  ;;  %s2132_s26 = int_to_ptr.vmem [resolvable:$true] %s1001_s26 }
 0x447   : > { %s982_s17 = scalar_lea.sflag [#allocation6], %s2032_s30  ;;  %s1665_s24 = scalar_lea.vmem %s2132_s26, 128 }
 0x448   : > { %p1666_p2 = scmp.ne.s32.totalorder %s2132_s26, %s1665_s24  ;;  %s1775_s15 = smov [#allocation16]  }
 0x449   : > { %s1669_s19 = sshll.u32 %s1775_s15, 4  ;;  %s1670_s19 = int_to_ptr.vmem [resolvable:$false] %s1669_s19 }
 0x44a   : > { %v1247_v57 = vld [vmem:[%s2250_s21] ss:$0 sm:$0xff]  ;;  %p1667_p5 = pnand %p1666_p2, %p2249_p12  ;;  %s1671_s28 = scalar_lea.vmem %s1670_s19, 256 }
 0x44b   : > { %p1672_p1 = scmp.lt.s32.totalorder %s2132_s26, %s1670_s19  ;;  %p1673_p7 = scmp.lt.s32.totalorder %s1671_s28, %s1665_s24 }
 0x44c   : > { %s2130_s11 = scalar_lea.hbm %s2251_s5, %s1253_s25  ;;  %p1668_p10 = pneg %p1667_p5 }
 0x44d   : > { %p1674_p4 = por %p1673_p7, %p1672_p1 }
 0x44f   : > { %p1675_p8 = pnand %p1674_p4, %p1668_p10 }
 0x4f4   : > { %v974_v58 = vpop.f32.mrf.mxu1 }
 0x4f5   : > { %v975_v59 = vadd.f32 %v1247_v57, %v974_v58 }
 0x4f6   : > { %v1315_v60 = vpop.f32.mrf.mxu1 }
 0x4f7   : > { %980 = vst.msk [vmem:[%s580_s13] sm:$0xff] %vm619_vm1, %v975_v59 }
 0x4f8   : > { %v977_v61 = vpop.f32.mrf.mxu1 }
 0x4f9   : > { %1678 = shalt.err (!%p1675_p8)
}
 0x4fa   : > { %s1679_s27 = scalar_lea.hbm %s2130_s11, 128  ;;  %s1683_s1 = scalar_lea.hbm %s2251_s5, 256 }
 0x4fb   : > { %p1680_p6 = scmp.ne.s32.totalorder %s2130_s11, %s1679_s27  ;;  %p1684_p13 = scmp.lt.s32.totalorder %s2130_s11, %s2251_s5 }
 0x4fc   : > { %p1685_p9 = scmp.lt.s32.totalorder %s1683_s1, %s1679_s27 }
 0x4fd   : > { %p1681_p3 = pnand %p1680_p6, %p2249_p12 }
 0x4fe   : > { %p1686_p11 = por %p1685_p9, %p1684_p13 }
 0x4ff   : > { %p1682_p0 = pneg %p1681_p3 }
 0x501   : > { %p1687_p2 = pnand %p1686_p11, %p1682_p0 }
 0x503   : > { %1690 = shalt.err (!%p1687_p2)
}
 0x504   : > { %1339 = dma.vmem_to_hbm [thread:$0]  (%p2249_p12), %s2132_s26, 128, %s2130_s11, %s982_s17   ;;  %v1316_v62 = vpop.f32.mrf.mxu1 }
 0x505 PF: > { %s2252_s10 = sld [smem:[#allocation25_spill]] }
 0x506   : > { %s2253_s12 = sld [smem:[#allocation31_spill]] }
 0x507   : > { %s2254_s21 = sld [smem:[#allocation27_spill]] }
 0x50b   : > { %s1027_s25 = sand.u32 1, %s2252_s10  }
 0x50c   : > { %p2255_p5 = scmp.ne.s32.totalorder %s2253_s12, 0  ;;  %s1028_s13 = scalar_lea.sflag [#allocation6], %s1027_s25 }
 0x50d   : > { %p2256_p10 = scmp.ge.s32.totalorder %s2254_s21, 2 }
 0x50f   : > { %p1367_p1 = pnand %p2256_p10, %p2255_p5 }
 0x511   : > { %p1368_p7 = pneg %p1367_p1 }
 0x513   : > { %1732 = dma.done.wait (%p1368_p7), %s1028_s13, 128  }
 0x514   : > { %1734 = vsyncadd (%p1368_p7), %s1028_s13, 4294967168  ;;  %s1037_s18 = scalar_lea.sflag [#allocation18], %s1027_s25 }
 0x515   : > { %1736 = dma.done.wait (%p1368_p7), %s1037_s18, 64  }
 0x516   : > { %1738 = vsyncadd (%p1368_p7), %s1037_s18, 4294967232  ;;  %s37_s26 = sadd.s32 1, %s2254_s21   ;;  %s2257_s29 = sld [smem:[#allocation30_spill]] }
 0x517   : > { %p34_p4 = scmp.ge.s32.totalorder %s37_s26, 4   ;;  %s2258_s24 = sld [smem:[#allocation26_spill]] }
 0x518   : > { %s2259_s25 = sld [smem:[#allocation28_spill]]  ;;  %s2260_s21 = smov %s1745_s22 }
 0x519   : > { %s2261_s22 = smov %s1749_s23  ;;  %36 = sbr.rel (!%p34_p4) target bundleno = 20 (0x14), region = 170 }
 0x51c   : > { %s2262_s23 = smov %s2257_s29 }
 0x51e   :  { %1042 = vsyncpa [#allocation5], 1 }
 0x51f   :  { %1044 = vsyncpa [#allocation5 + $0x1], 1 }
 0x520   :  { %1045 = vsyncpa [#allocation8], 1 }
 0x521   :  { %1047 = vsyncpa [#allocation8 + $0x1], 1 }
 0x522   :  { %1048 = vsyncpa [#allocation11], 1 }
 0x523   :  { %1049 = vsyncpa [#allocation14], 1 }
 0x524   :  { %1050 = vsyncpa [#allocation6], 1 }
 0x525   :  { %1052 = vsyncpa [#allocation6 + $0x1], 1 }
 0x526   :  { %1053 = vsyncpa [#allocation18], 1 }
 0x527   :  { %1055 = vsyncpa [#allocation18 + $0x1], 1 }

</bundles_post_ra>
